<compile_context>
chip_gen: v6e
topology: v6e:2x2x1
jax: 0.10.0
libtpu: 0.0.40
codegen_flags: <defaults>
</compile_context>

<pallas_src>
import math

import jax
import jax.numpy as jnp
from jax.experimental import pallas as pl
from jax.experimental.pallas import tpu as pltpu

# ----------------------------- model hyper-params ---------------------------
D_MODEL = 32        # encoder hidden size
N_HEADS = 4
D_HEAD = D_MODEL // N_HEADS
D_FFN = 64
N_LAYERS = 2
LN_EPS = 1e-12      # ESPnet LayerNorm eps
_NEG_INF = -1e9

_VMEM = pl.BlockSpec(memory_space=pltpu.MemorySpace.VMEM)


# ------------------------------ Pallas kernels ------------------------------
def _frontend1_kernel(p_ref, mean_ref, istd_ref, w_ref, b_ref, o_ref):
    """GlobalMVN (folded, patch-aligned constants) + conv1-as-matmul + ReLU."""
    p = (p_ref[...] - mean_ref[...]) * istd_ref[...]
    h = jnp.dot(p, w_ref[...], preferred_element_type=jnp.float32) + b_ref[...]
    o_ref[...] = jnp.maximum(h, 0.0).astype(o_ref.dtype)


def frontend1(p, mean_p, istd_p, w, b):
    return pl.pallas_call(
        _frontend1_kernel,
        out_shape=jax.ShapeDtypeStruct((p.shape[0], w.shape[1]), jnp.float32),
        in_specs=[_VMEM] * 5,
        out_specs=_VMEM,
    )(p, mean_p, istd_p, w, b)


def _frontend2_kernel(p_ref, w2_ref, b2_ref, we_ref, be_ref, pe_ref, o_ref):
    """conv2-as-matmul (block-diag, lane-dense output) + ReLU + embed Linear + PosEnc.

    sqrt(d_model) positional-encoding scale is pre-folded into we/be.
    """
    h = jnp.dot(p_ref[...], w2_ref[...], preferred_element_type=jnp.float32) + b2_ref[...]
    h = jnp.maximum(h, 0.0)
    y = jnp.dot(h, we_ref[...], preferred_element_type=jnp.float32) + be_ref[...]
    o_ref[...] = (y + pe_ref[...]).astype(o_ref.dtype)


def frontend2(p, w2, b2, we, be, pe):
    return pl.pallas_call(
        _frontend2_kernel,
        out_shape=jax.ShapeDtypeStruct((p.shape[0], we.shape[1]), jnp.float32),
        in_specs=[_VMEM] * 6,
        out_specs=_VMEM,
    )(p, w2, b2, we, be, pe)


def _encoder_stack_kernel(x_ref, bias_ref, wqkv_ref, bqkv_ref, wo_ref, bo_ref,
                          ln1g_ref, ln1b_ref, ln2g_ref, ln2b_ref,
                          ff1w_ref, ff1b_ref, ff2w_ref, ff2b_ref,
                          afg_ref, afb_ref, o_ref):
    """All N_LAYERS transformer encoder layers (normalize_before=True) + final LN.

    Everything stays in registers/VMEM; batching of attention is handled with a
    block-diagonal additive mask (no per-batch grid, no cross-utterance attention).
    1/sqrt(d_k) is pre-folded into the Q projection weights.
    """
    def layernorm(x, g, b):
        mu = jnp.mean(x, axis=-1, keepdims=True)
        xc = x - mu
        var = jnp.mean(xc * xc, axis=-1, keepdims=True)
        return xc * jax.lax.rsqrt(var + LN_EPS) * g + b

    x = x_ref[...].astype(jnp.float32)            # (M, D) with M = B*T2
    bias = bias_ref[...]                          # (M, M) block-diagonal mask

    for l in range(N_LAYERS):
        # ---------------- pre-LN multi-head self-attention ----------------
        xn = layernorm(x, ln1g_ref[l], ln1b_ref[l])
        qkv = jnp.dot(xn, wqkv_ref[l],
                      preferred_element_type=jnp.float32) + bqkv_ref[l]   # (M, 3D)
        wo_l = wo_ref[l]                                                  # (D, D)

        attn = jnp.zeros_like(x)
        for h in range(N_HEADS):
            c0 = h * D_HEAD
            qh = qkv[:, c0:c0 + D_HEAD]
            kh = qkv[:, D_MODEL + c0:D_MODEL + c0 + D_HEAD]
            vh = qkv[:, 2 * D_MODEL + c0:2 * D_MODEL + c0 + D_HEAD]
            # scores (scale already folded into Wq) + batch mask
            s = jax.lax.dot_general(qh, kh, (((1,), (1,)), ((), ())),
                                    preferred_element_type=jnp.float32) + bias
            m = jnp.max(s, axis=-1, keepdims=True)
            p = jnp.exp(s - m)
            p = p * pl.reciprocal(jnp.sum(p, axis=-1, keepdims=True), approx=True)
            oh = jnp.dot(p, vh, preferred_element_type=jnp.float32)       # (M, dk)
            # fold the per-head output projection into the accumulation
            attn = attn + jnp.dot(oh, wo_l[c0:c0 + D_HEAD, :],
                                  preferred_element_type=jnp.float32)
        x = x + attn + bo_ref[l]

        # ---------------- pre-LN position-wise feed-forward ----------------
        xn = layernorm(x, ln2g_ref[l], ln2b_ref[l])
        hf = jnp.maximum(jnp.dot(xn, ff1w_ref[l],
                                 preferred_element_type=jnp.float32) + ff1b_ref[l], 0.0)
        x = x + jnp.dot(hf, ff2w_ref[l],
                        preferred_element_type=jnp.float32) + ff2b_ref[l]

    # final LayerNorm (after_norm)
    x = layernorm(x, afg_ref[...], afb_ref[...])
    o_ref[...] = x.astype(o_ref.dtype)


def encoder_stack(x, params):
    inputs = (x, params["attn_bias"],
              params["wqkv"], params["bqkv"], params["wo"], params["bo"],
              params["ln1_g"], params["ln1_b"], params["ln2_g"], params["ln2_b"],
              params["ff1_w"], params["ff1_b"], params["ff2_w"], params["ff2_b"],
              params["after_ln_g"], params["after_ln_b"])
    return pl.pallas_call(
        _encoder_stack_kernel,
        out_shape=jax.ShapeDtypeStruct(x.shape, x.dtype),
        in_specs=[_VMEM] * len(inputs),
        out_specs=_VMEM,
    )(*inputs)


# ------------------------------- JAX-side glue -------------------------------
def im2col(x, kh, kw, stride):
    """x: (B, H, W, C) -> patches (B, Ho, Wo, kh*kw*C) for a VALID conv (NHWC)."""
    B, H, W, C = x.shape
    Ho = (H - kh) // stride + 1
    Wo = (W - kw) // stride + 1
    cols = []
    for di in range(kh):
        for dj in range(kw):
            cols.append(x[:, di:di + stride * (Ho - 1) + 1:stride,
                          dj:dj + stride * (Wo - 1) + 1:stride, :])
    return jnp.concatenate(cols, axis=-1), Ho, Wo


def espnet_encode(speech, params):
    """speech: (B, T, F) float32 features -> encoder output (B, T', D_MODEL)."""
    speech = speech.astype(jnp.float32)
    B, T, F = speech.shape

    # Conv2dSubsampling stage 1 (GlobalMVN folded into the Pallas kernel)
    p1, T1, F1 = im2col(speech[..., None], 3, 3, 2)             # (B, T1, F1, 9)
    h1 = frontend1(p1.reshape(-1, 9),
                   params["mvn_mean_p"], params["mvn_istd_p"],
                   params["conv1_w"], params["conv1_b"])        # (B*T1*F1, D)
    h1 = h1.reshape(B, T1, F1, D_MODEL)

    # stage 2: conv2 + ReLU + embed Linear + scaled sinusoidal PosEnc (one kernel)
    p2, T2, F2 = im2col(h1, 3, 3, 2)                            # (B, T2, F2, 9*D)
    p2 = p2.reshape(B * T2, F2 * 9 * D_MODEL)
    x = frontend2(p2, params["conv2_w_big"], params["conv2_b_big"],
                  params["embed_w"], params["embed_b"], params["pe"])   # (B*T2, D)

    # full transformer encoder stack + final LayerNorm in a single kernel
    x = encoder_stack(x, params)
    return x.reshape(B, T2, D_MODEL)


# --------------------------- deterministic parameters ------------------------
def sinusoidal_pe(max_len, d):
    pos = jnp.arange(max_len, dtype=jnp.float32)[:, None]
    div = jnp.exp(jnp.arange(0, d, 2, dtype=jnp.float32) * (-math.log(10000.0) / d))
    pe = jnp.zeros((max_len, d), jnp.float32)
    pe = pe.at[:, 0::2].set(jnp.sin(pos * div))
    pe = pe.at[:, 1::2].set(jnp.cos(pos * div))
    return pe[None]                                             # (1, max_len, d)


def make_params(key, n_feat, batch, t_in):
    keys = iter(jax.random.split(key, 64))

    def w(shape, scale=0.02):
        return (scale * jax.random.normal(next(keys), shape)).astype(jnp.float32)

    def zeros(shape):
        return jnp.zeros(shape, jnp.float32)

    def ones(shape):
        return jnp.ones(shape, jnp.float32)

    T1 = (t_in - 3) // 2 + 1
    F1 = (n_feat - 3) // 2 + 1
    T2 = (T1 - 3) // 2 + 1
    F2 = (F1 - 3) // 2 + 1

    # GlobalMVN stats, expanded to the conv1 im2col patch layout (row = (b,t1,f1), col = di*3+dj)
    mvn_mean = 0.1 * jnp.arange(n_feat, dtype=jnp.float32)
    mvn_istd = 1.0 / (1.0 + 0.05 * jnp.arange(n_feat, dtype=jnp.float32))
    dj = jnp.arange(9) % 3
    f_in = 2 * jnp.arange(F1)[:, None] + dj[None, :]            # (F1, 9) input-freq index
    mean_p = jnp.tile(mvn_mean[f_in], (batch * T1, 1))          # (B*T1*F1, 9)
    istd_p = jnp.tile(mvn_istd[f_in], (batch * T1, 1))

    conv1_w = w((9, D_MODEL))
    conv1_b = zeros((1, D_MODEL))

    conv2_w = w((9 * D_MODEL, D_MODEL))                         # rows in (di, dj, c_in) order
    conv2_b = zeros((1, D_MODEL))
    # block-diagonal conv2 weight: one matmul emits the (f2, c) lane-ordered slab (no reshape)
    k2 = 9 * D_MODEL
    w2_big = jnp.zeros((F2 * k2, F2 * D_MODEL), jnp.float32)
    for f2 in range(F2):
        w2_big = w2_big.at[f2 * k2:(f2 + 1) * k2,
                           f2 * D_MODEL:(f2 + 1) * D_MODEL].set(conv2_w)
    b2_big = jnp.tile(conv2_b, (1, F2))

    # embed Linear: ESPnet row order is (c, f2); permute to (f2, c) to match the conv2
    # output lane order, and fold in the sqrt(d_model) positional-encoding scale.
    embed_w = w((D_MODEL * F2, D_MODEL))
    embed_b = zeros((1, D_MODEL))
    r = jnp.arange(F2 * D_MODEL)
    perm = (r % D_MODEL) * F2 + (r // D_MODEL)
    scale = math.sqrt(D_MODEL)
    embed_w_p = embed_w[perm, :] * scale
    embed_b_p = embed_b * scale

    pe = sinusoidal_pe(64, D_MODEL)
    pe_full = jnp.tile(pe[0, :T2, :], (batch, 1))               # (B*T2, D)

    # block-diagonal attention bias: no cross-utterance attention
    seg = jnp.repeat(jnp.arange(batch), T2)
    attn_bias = jnp.where(seg[:, None] == seg[None, :], 0.0, _NEG_INF).astype(jnp.float32)

    qscale = 1.0 / math.sqrt(D_HEAD)                            # folded into Wq (bq is zero)
    wqkv, bqkv, wo, bo = [], [], [], []
    ln1g, ln1b, ln2g, ln2b = [], [], [], []
    ff1w, ff1b, ff2w, ff2b = [], [], [], []
    for _ in range(N_LAYERS):
        wq = w((D_MODEL, D_MODEL)) * qscale
        wk = w((D_MODEL, D_MODEL))
        wv = w((D_MODEL, D_MODEL))
        wqkv.append(jnp.concatenate([wq, wk, wv], axis=1))      # (D, 3D)
        bqkv.append(zeros((1, 3 * D_MODEL)))
        wo.append(w((D_MODEL, D_MODEL)))
        bo.append(zeros((1, D_MODEL)))
        ln1g.append(ones((1, D_MODEL)))
        ln1b.append(zeros((1, D_MODEL)))
        ln2g.append(ones((1, D_MODEL)))
        ln2b.append(zeros((1, D_MODEL)))
        ff1w.append(w((D_MODEL, D_FFN)))
        ff1b.append(zeros((1, D_FFN)))
        ff2w.append(w((D_FFN, D_MODEL)))
        ff2b.append(zeros((1, D_MODEL)))

    stack = lambda xs: jnp.stack(xs, axis=0)
    return {
        "mvn_mean_p": mean_p, "mvn_istd_p": istd_p,
        "conv1_w": conv1_w, "conv1_b": conv1_b,
        "conv2_w_big": w2_big, "conv2_b_big": b2_big,
        "embed_w": embed_w_p, "embed_b": embed_b_p,
        "pe": pe_full, "attn_bias": attn_bias,
        "wqkv": stack(wqkv), "bqkv": stack(bqkv),
        "wo": stack(wo), "bo": stack(bo),
        "ln1_g": stack(ln1g), "ln1_b": stack(ln1b),
        "ln2_g": stack(ln2g), "ln2_b": stack(ln2b),
        "ff1_w": stack(ff1w), "ff1_b": stack(ff1b),
        "ff2_w": stack(ff2w), "ff2_b": stack(ff2b),
        "after_ln_g": ones((1, D_MODEL)), "after_ln_b": zeros((1, D_MODEL)),
    }


# ------------------------------------ main -----------------------------------
if __name__ == "__main__":
    key = jax.random.PRNGKey(0)
    k_data, k_param = jax.random.split(key)

    B, T, F = 2, 16, 16
    speech = jax.random.normal(k_data, (B, T, F), dtype=jnp.float32)
    params = make_params(k_param, F, B, T)

    enc = jax.jit(espnet_encode)(speech, params)
    enc = jax.block_until_ready(enc)

    assert enc.shape == (B, 3, D_MODEL), enc.shape
    assert enc.dtype == jnp.float32
    assert bool(jnp.all(jnp.isfinite(enc)))
    print("KERNEL_OK")
</pallas_src>

<mosaic_0001>
module attributes {stable_mosaic.version = 11 : i64} {
  func.func @_frontend1_kernel(%arg0: memref<98x9xf32, #tpu.memory_space<vmem>>, %arg1: memref<98x9xf32, #tpu.memory_space<vmem>>, %arg2: memref<98x9xf32, #tpu.memory_space<vmem>>, %arg3: memref<9x32xf32, #tpu.memory_space<vmem>>, %arg4: memref<1x32xf32, #tpu.memory_space<vmem>>, %arg5: memref<98x32xf32, #tpu.memory_space<vmem>>) attributes {dimension_semantics = [], scalar_prefetch = 0 : i64, scratch_operands = 0 : i64, tpu.core_type = #tpu.core_type<tc>} {
    %c0 = arith.constant 0 : index
    %c0_0 = arith.constant 0 : index
    %0 = vector.load %arg0[%c0, %c0_0] : memref<98x9xf32, #tpu.memory_space<vmem>>, vector<98x9xf32>
    %c0_1 = arith.constant 0 : index
    %c0_2 = arith.constant 0 : index
    %1 = vector.load %arg1[%c0_1, %c0_2] : memref<98x9xf32, #tpu.memory_space<vmem>>, vector<98x9xf32>
    %2 = arith.subf %0, %1 : vector<98x9xf32>
    %c0_3 = arith.constant 0 : index
    %c0_4 = arith.constant 0 : index
    %3 = vector.load %arg2[%c0_3, %c0_4] : memref<98x9xf32, #tpu.memory_space<vmem>>, vector<98x9xf32>
    %4 = arith.mulf %2, %3 : vector<98x9xf32>
    %c0_5 = arith.constant 0 : index
    %c0_6 = arith.constant 0 : index
    %5 = vector.load %arg3[%c0_5, %c0_6] : memref<9x32xf32, #tpu.memory_space<vmem>>, vector<9x32xf32>
    %cst = arith.constant dense<0.000000e+00> : vector<98x32xf32>
    %6 = tpu.matmul %4, %5, %cst {dimension_numbers = #tpu.dot_dimension_numbers<[1], [0], [0], [1], [0, 0, 1, 1], [], []>} : vector<98x9xf32>, vector<9x32xf32>, vector<98x32xf32> -> vector<98x32xf32>
    %c0_7 = arith.constant 0 : index
    %c0_8 = arith.constant 0 : index
    %7 = vector.load %arg4[%c0_7, %c0_8] : memref<1x32xf32, #tpu.memory_space<vmem>>, vector<1x32xf32>
    %8 = vector.broadcast %7 : vector<1x32xf32> to vector<98x32xf32>
    %9 = arith.addf %6, %8 : vector<98x32xf32>
    %cst_9 = arith.constant 0.000000e+00 : f32
    %10 = vector.broadcast %cst_9 : f32 to vector<98x32xf32>
    %11 = arith.maximumf %9, %10 : vector<98x32xf32>
    %c0_10 = arith.constant 0 : index
    %c0_11 = arith.constant 0 : index
    %12 = vector.load %arg5[%c0_10, %c0_11] : memref<98x32xf32, #tpu.memory_space<vmem>>, vector<98x32xf32>
    tpu.vector_store %arg5[%c0_10, %c0_11], %11 {strides = array<i32>} : memref<98x32xf32, #tpu.memory_space<vmem>>, vector<98x32xf32>,
    return
  }
}

module attributes {stable_mosaic.version = 11 : i64} {
  func.func @_frontend2_kernel(%arg0: memref<6x864xf32, #tpu.memory_space<vmem>>, %arg1: memref<864x96xf32, #tpu.memory_space<vmem>>, %arg2: memref<1x96xf32, #tpu.memory_space<vmem>>, %arg3: memref<96x32xf32, #tpu.memory_space<vmem>>, %arg4: memref<1x32xf32, #tpu.memory_space<vmem>>, %arg5: memref<6x32xf32, #tpu.memory_space<vmem>>, %arg6: memref<6x32xf32, #tpu.memory_space<vmem>>) attributes {dimension_semantics = [], scalar_prefetch = 0 : i64, scratch_operands = 0 : i64, tpu.core_type = #tpu.core_type<tc>} {
    %c0 = arith.constant 0 : index
    %c0_0 = arith.constant 0 : index
    %0 = vector.load %arg0[%c0, %c0_0] : memref<6x864xf32, #tpu.memory_space<vmem>>, vector<6x864xf32>
    %c0_1 = arith.constant 0 : index
    %c0_2 = arith.constant 0 : index
    %1 = vector.load %arg1[%c0_1, %c0_2] : memref<864x96xf32, #tpu.memory_space<vmem>>, vector<864x96xf32>
    %cst = arith.constant dense<0.000000e+00> : vector<6x96xf32>
    %2 = tpu.matmul %0, %1, %cst {dimension_numbers = #tpu.dot_dimension_numbers<[1], [0], [0], [1], [0, 0, 1, 1], [], []>} : vector<6x864xf32>, vector<864x96xf32>, vector<6x96xf32> -> vector<6x96xf32>
    %c0_3 = arith.constant 0 : index
    %c0_4 = arith.constant 0 : index
    %3 = vector.load %arg2[%c0_3, %c0_4] : memref<1x96xf32, #tpu.memory_space<vmem>>, vector<1x96xf32>
    %4 = vector.broadcast %3 : vector<1x96xf32> to vector<6x96xf32>
    %5 = arith.addf %2, %4 : vector<6x96xf32>
    %cst_5 = arith.constant 0.000000e+00 : f32
    %6 = vector.broadcast %cst_5 : f32 to vector<6x96xf32>
    %7 = arith.maximumf %5, %6 : vector<6x96xf32>
    %c0_6 = arith.constant 0 : index
    %c0_7 = arith.constant 0 : index
    %8 = vector.load %arg3[%c0_6, %c0_7] : memref<96x32xf32, #tpu.memory_space<vmem>>, vector<96x32xf32>
    %cst_8 = arith.constant dense<0.000000e+00> : vector<6x32xf32>
    %9 = tpu.matmul %7, %8, %cst_8 {dimension_numbers = #tpu.dot_dimension_numbers<[1], [0], [0], [1], [0, 0, 1, 1], [], []>} : vector<6x96xf32>, vector<96x32xf32>, vector<6x32xf32> -> vector<6x32xf32>
    %c0_9 = arith.constant 0 : index
    %c0_10 = arith.constant 0 : index
    %10 = vector.load %arg4[%c0_9, %c0_10] : memref<1x32xf32, #tpu.memory_space<vmem>>, vector<1x32xf32>
    %11 = vector.broadcast %10 : vector<1x32xf32> to vector<6x32xf32>
    %12 = arith.addf %9, %11 : vector<6x32xf32>
    %c0_11 = arith.constant 0 : index
    %c0_12 = arith.constant 0 : index
    %13 = vector.load %arg5[%c0_11, %c0_12] : memref<6x32xf32, #tpu.memory_space<vmem>>, vector<6x32xf32>
    %14 = arith.addf %12, %13 : vector<6x32xf32>
    %c0_13 = arith.constant 0 : index
    %c0_14 = arith.constant 0 : index
    %15 = vector.load %arg6[%c0_13, %c0_14] : memref<6x32xf32, #tpu.memory_space<vmem>>, vector<6x32xf32>
    tpu.vector_store %arg6[%c0_13, %c0_14], %14 {strides = array<i32>} : memref<6x32xf32, #tpu.memory_space<vmem>>, vector<6x32xf32>,
    return
  }
}

module attributes {stable_mosaic.version = 11 : i64} {
  func.func @_encoder_stack_kernel(%arg0: memref<6x32xf32, #tpu.memory_space<vmem>>, %arg1: memref<6x6xf32, #tpu.memory_space<vmem>>, %arg2: memref<2x32x96xf32, #tpu.memory_space<vmem>>, %arg3: memref<2x1x96xf32, #tpu.memory_space<vmem>>, %arg4: memref<2x32x32xf32, #tpu.memory_space<vmem>>, %arg5: memref<2x1x32xf32, #tpu.memory_space<vmem>>, %arg6: memref<2x1x32xf32, #tpu.memory_space<vmem>>, %arg7: memref<2x1x32xf32, #tpu.memory_space<vmem>>, %arg8: memref<2x1x32xf32, #tpu.memory_space<vmem>>, %arg9: memref<2x1x32xf32, #tpu.memory_space<vmem>>, %arg10: memref<2x32x64xf32, #tpu.memory_space<vmem>>, %arg11: memref<2x1x64xf32, #tpu.memory_space<vmem>>, %arg12: memref<2x64x32xf32, #tpu.memory_space<vmem>>, %arg13: memref<2x1x32xf32, #tpu.memory_space<vmem>>, %arg14: memref<1x32xf32, #tpu.memory_space<vmem>>, %arg15: memref<1x32xf32, #tpu.memory_space<vmem>>, %arg16: memref<6x32xf32, #tpu.memory_space<vmem>>) attributes {dimension_semantics = [], scalar_prefetch = 0 : i64, scratch_operands = 0 : i64, tpu.core_type = #tpu.core_type<tc>} {
    %c0 = arith.constant 0 : index
    %c0_0 = arith.constant 0 : index
    %0 = vector.load %arg0[%c0, %c0_0] : memref<6x32xf32, #tpu.memory_space<vmem>>, vector<6x32xf32>
    %c0_1 = arith.constant 0 : index
    %c0_2 = arith.constant 0 : index
    %1 = vector.load %arg1[%c0_1, %c0_2] : memref<6x6xf32, #tpu.memory_space<vmem>>, vector<6x6xf32>
    %c0_3 = arith.constant 0 : index
    %c0_4 = arith.constant 0 : index
    %c0_5 = arith.constant 0 : index
    %2 = vector.load %arg6[%c0_3, %c0_4, %c0_5] : memref<2x1x32xf32, #tpu.memory_space<vmem>>, vector<1x1x32xf32>
    %3 = vector.shape_cast %2 : vector<1x1x32xf32> to vector<1x32xf32>
    %c0_6 = arith.constant 0 : index
    %c0_7 = arith.constant 0 : index
    %c0_8 = arith.constant 0 : index
    %4 = vector.load %arg7[%c0_6, %c0_7, %c0_8] : memref<2x1x32xf32, #tpu.memory_space<vmem>>, vector<1x1x32xf32>
    %5 = vector.shape_cast %4 : vector<1x1x32xf32> to vector<1x32xf32>
    %cst = arith.constant dense<0.000000e+00> : vector<6xf32>
    %6 = vector.multi_reduction <add>, %0, %cst [1] : vector<6x32xf32> to vector<6xf32>
    %7 = vector.shape_cast %6 : vector<6xf32> to vector<6x1xf32>
    %cst_9 = arith.constant 3.200000e+01 : f32
    %8 = vector.broadcast %cst_9 : f32 to vector<6x1xf32>
    %9 = arith.divf %7, %8 : vector<6x1xf32>
    %10 = vector.broadcast %9 : vector<6x1xf32> to vector<6x32xf32>
    %11 = arith.subf %0, %10 : vector<6x32xf32>
    %12 = arith.mulf %11, %11 : vector<6x32xf32>
    %cst_10 = arith.constant dense<0.000000e+00> : vector<6xf32>
    %13 = vector.multi_reduction <add>, %12, %cst_10 [1] : vector<6x32xf32> to vector<6xf32>
    %14 = vector.shape_cast %13 : vector<6xf32> to vector<6x1xf32>
    %cst_11 = arith.constant 3.200000e+01 : f32
    %15 = vector.broadcast %cst_11 : f32 to vector<6x1xf32>
    %16 = arith.divf %14, %15 : vector<6x1xf32>
    %cst_12 = arith.constant 9.99999996E-13 : f32
    %17 = vector.broadcast %cst_12 : f32 to vector<6x1xf32>
    %18 = arith.addf %16, %17 : vector<6x1xf32>
    %19 = math.rsqrt %18 : vector<6x1xf32>
    %20 = vector.broadcast %19 : vector<6x1xf32> to vector<6x32xf32>
    %21 = arith.mulf %11, %20 : vector<6x32xf32>
    %22 = vector.broadcast %3 : vector<1x32xf32> to vector<6x32xf32>
    %23 = arith.mulf %21, %22 : vector<6x32xf32>
    %24 = vector.broadcast %5 : vector<1x32xf32> to vector<6x32xf32>
    %25 = arith.addf %23, %24 : vector<6x32xf32>
    %c0_13 = arith.constant 0 : index
    %c0_14 = arith.constant 0 : index
    %c0_15 = arith.constant 0 : index
    %26 = vector.load %arg2[%c0_13, %c0_14, %c0_15] : memref<2x32x96xf32, #tpu.memory_space<vmem>>, vector<1x32x96xf32>
    %27 = vector.shape_cast %26 : vector<1x32x96xf32> to vector<32x96xf32>
    %cst_16 = arith.constant dense<0.000000e+00> : vector<6x96xf32>
    %28 = tpu.matmul %25, %27, %cst_16 {dimension_numbers = #tpu.dot_dimension_numbers<[1], [0], [0], [1], [0, 0, 1, 1], [], []>} : vector<6x32xf32>, vector<32x96xf32>, vector<6x96xf32> -> vector<6x96xf32>
    %c0_17 = arith.constant 0 : index
    %c0_18 = arith.constant 0 : index
    %c0_19 = arith.constant 0 : index
    %29 = vector.load %arg3[%c0_17, %c0_18, %c0_19] : memref<2x1x96xf32, #tpu.memory_space<vmem>>, vector<1x1x96xf32>
    %30 = vector.shape_cast %29 : vector<1x1x96xf32> to vector<1x96xf32>
    %31 = vector.broadcast %30 : vector<1x96xf32> to vector<6x96xf32>
    %32 = arith.addf %28, %31 : vector<6x96xf32>
    %c0_20 = arith.constant 0 : index
    %c0_21 = arith.constant 0 : index
    %c0_22 = arith.constant 0 : index
    %33 = vector.load %arg4[%c0_20, %c0_21, %c0_22] : memref<2x32x32xf32, #tpu.memory_space<vmem>>, vector<1x32x32xf32>
    %34 = vector.shape_cast %33 : vector<1x32x32xf32> to vector<32x32xf32>
    %cst_23 = arith.constant 0.000000e+00 : f32
    %35 = vector.broadcast %cst_23 : f32 to vector<6x32xf32>
    %36 = vector.extract_strided_slice %32 {offsets = [0, 0], sizes = [6, 8], strides = [1, 1]} : vector<6x96xf32> to vector<6x8xf32>
    %37 = vector.extract_strided_slice %32 {offsets = [0, 32], sizes = [6, 8], strides = [1, 1]} : vector<6x96xf32> to vector<6x8xf32>
    %38 = vector.extract_strided_slice %32 {offsets = [0, 64], sizes = [6, 8], strides = [1, 1]} : vector<6x96xf32> to vector<6x8xf32>
    %cst_24 = arith.constant dense<0.000000e+00> : vector<6x6xf32>
    %39 = tpu.matmul %36, %37, %cst_24 {dimension_numbers = #tpu.dot_dimension_numbers<[1], [1], [0], [0], [0, 0, 1, 0], [], []>} : vector<6x8xf32>, vector<6x8xf32>, vector<6x6xf32> -> vector<6x6xf32>
    %40 = arith.addf %39, %1 : vector<6x6xf32>
    %cst_25 = arith.constant dense<0xFF800000> : vector<6xf32>
    %41 = vector.multi_reduction <maximumf>, %40, %cst_25 [1] : vector<6x6xf32> to vector<6xf32>
    %42 = vector.shape_cast %41 : vector<6xf32> to vector<6x1xf32>
    %43 = vector.broadcast %42 : vector<6x1xf32> to vector<6x6xf32>
    %44 = arith.subf %40, %43 : vector<6x6xf32>
    %45 = math.exp %44 : vector<6x6xf32>
    %cst_26 = arith.constant dense<0.000000e+00> : vector<6xf32>
    %46 = vector.multi_reduction <add>, %45, %cst_26 [1] : vector<6x6xf32> to vector<6xf32>
    %47 = vector.shape_cast %46 : vector<6xf32> to vector<6x1xf32>
    %48 = tpu.reciprocal %47 {approx = true} : vector<6x1xf32> -> vector<6x1xf32>
    %49 = vector.broadcast %48 : vector<6x1xf32> to vector<6x6xf32>
    %50 = arith.mulf %45, %49 : vector<6x6xf32>
    %cst_27 = arith.constant dense<0.000000e+00> : vector<6x8xf32>
    %51 = tpu.matmul %50, %38, %cst_27 {dimension_numbers = #tpu.dot_dimension_numbers<[1], [0], [0], [1], [0, 0, 1, 1], [], []>} : vector<6x6xf32>, vector<6x8xf32>, vector<6x8xf32> -> vector<6x8xf32>
    %52 = vector.extract_strided_slice %34 {offsets = [0, 0], sizes = [8, 32], strides = [1, 1]} : vector<32x32xf32> to vector<8x32xf32>
    %cst_28 = arith.constant dense<0.000000e+00> : vector<6x32xf32>
    %53 = tpu.matmul %51, %52, %cst_28 {dimension_numbers = #tpu.dot_dimension_numbers<[1], [0], [0], [1], [0, 0, 1, 1], [], []>} : vector<6x8xf32>, vector<8x32xf32>, vector<6x32xf32> -> vector<6x32xf32>
    %54 = arith.addf %35, %53 : vector<6x32xf32>
    %55 = vector.extract_strided_slice %32 {offsets = [0, 8], sizes = [6, 8], strides = [1, 1]} : vector<6x96xf32> to vector<6x8xf32>
    %56 = vector.extract_strided_slice %32 {offsets = [0, 40], sizes = [6, 8], strides = [1, 1]} : vector<6x96xf32> to vector<6x8xf32>
    %57 = vector.extract_strided_slice %32 {offsets = [0, 72], sizes = [6, 8], strides = [1, 1]} : vector<6x96xf32> to vector<6x8xf32>
    %cst_29 = arith.constant dense<0.000000e+00> : vector<6x6xf32>
    %58 = tpu.matmul %55, %56, %cst_29 {dimension_numbers = #tpu.dot_dimension_numbers<[1], [1], [0], [0], [0, 0, 1, 0], [], []>} : vector<6x8xf32>, vector<6x8xf32>, vector<6x6xf32> -> vector<6x6xf32>
    %59 = arith.addf %58, %1 : vector<6x6xf32>
    %cst_30 = arith.constant dense<0xFF800000> : vector<6xf32>
    %60 = vector.multi_reduction <maximumf>, %59, %cst_30 [1] : vector<6x6xf32> to vector<6xf32>
    %61 = vector.shape_cast %60 : vector<6xf32> to vector<6x1xf32>
    %62 = vector.broadcast %61 : vector<6x1xf32> to vector<6x6xf32>
    %63 = arith.subf %59, %62 : vector<6x6xf32>
    %64 = math.exp %63 : vector<6x6xf32>
    %cst_31 = arith.constant dense<0.000000e+00> : vector<6xf32>
    %65 = vector.multi_reduction <add>, %64, %cst_31 [1] : vector<6x6xf32> to vector<6xf32>
    %66 = vector.shape_cast %65 : vector<6xf32> to vector<6x1xf32>
    %67 = tpu.reciprocal %66 {approx = true} : vector<6x1xf32> -> vector<6x1xf32>
    %68 = vector.broadcast %67 : vector<6x1xf32> to vector<6x6xf32>
    %69 = arith.mulf %64, %68 : vector<6x6xf32>
    %cst_32 = arith.constant dense<0.000000e+00> : vector<6x8xf32>
    %70 = tpu.matmul %69, %57, %cst_32 {dimension_numbers = #tpu.dot_dimension_numbers<[1], [0], [0], [1], [0, 0, 1, 1], [], []>} : vector<6x6xf32>, vector<6x8xf32>, vector<6x8xf32> -> vector<6x8xf32>
    %71 = vector.extract_strided_slice %34 {offsets = [8, 0], sizes = [8, 32], strides = [1, 1]} : vector<32x32xf32> to vector<8x32xf32>
    %cst_33 = arith.constant dense<0.000000e+00> : vector<6x32xf32>
    %72 = tpu.matmul %70, %71, %cst_33 {dimension_numbers = #tpu.dot_dimension_numbers<[1], [0], [0], [1], [0, 0, 1, 1], [], []>} : vector<6x8xf32>, vector<8x32xf32>, vector<6x32xf32> -> vector<6x32xf32>
    %73 = arith.addf %54, %72 : vector<6x32xf32>
    %74 = vector.extract_strided_slice %32 {offsets = [0, 16], sizes = [6, 8], strides = [1, 1]} : vector<6x96xf32> to vector<6x8xf32>
    %75 = vector.extract_strided_slice %32 {offsets = [0, 48], sizes = [6, 8], strides = [1, 1]} : vector<6x96xf32> to vector<6x8xf32>
    %76 = vector.extract_strided_slice %32 {offsets = [0, 80], sizes = [6, 8], strides = [1, 1]} : vector<6x96xf32> to vector<6x8xf32>
    %cst_34 = arith.constant dense<0.000000e+00> : vector<6x6xf32>
    %77 = tpu.matmul %74, %75, %cst_34 {dimension_numbers = #tpu.dot_dimension_numbers<[1], [1], [0], [0], [0, 0, 1, 0], [], []>} : vector<6x8xf32>, vector<6x8xf32>, vector<6x6xf32> -> vector<6x6xf32>
    %78 = arith.addf %77, %1 : vector<6x6xf32>
    %cst_35 = arith.constant dense<0xFF800000> : vector<6xf32>
    %79 = vector.multi_reduction <maximumf>, %78, %cst_35 [1] : vector<6x6xf32> to vector<6xf32>
    %80 = vector.shape_cast %79 : vector<6xf32> to vector<6x1xf32>
    %81 = vector.broadcast %80 : vector<6x1xf32> to vector<6x6xf32>
    %82 = arith.subf %78, %81 : vector<6x6xf32>
    %83 = math.exp %82 : vector<6x6xf32>
    %cst_36 = arith.constant dense<0.000000e+00> : vector<6xf32>
    %84 = vector.multi_reduction <add>, %83, %cst_36 [1] : vector<6x6xf32> to vector<6xf32>
    %85 = vector.shape_cast %84 : vector<6xf32> to vector<6x1xf32>
    %86 = tpu.reciprocal %85 {approx = true} : vector<6x1xf32> -> vector<6x1xf32>
    %87 = vector.broadcast %86 : vector<6x1xf32> to vector<6x6xf32>
    %88 = arith.mulf %83, %87 : vector<6x6xf32>
    %cst_37 = arith.constant dense<0.000000e+00> : vector<6x8xf32>
    %89 = tpu.matmul %88, %76, %cst_37 {dimension_numbers = #tpu.dot_dimension_numbers<[1], [0], [0], [1], [0, 0, 1, 1], [], []>} : vector<6x6xf32>, vector<6x8xf32>, vector<6x8xf32> -> vector<6x8xf32>
    %90 = vector.extract_strided_slice %34 {offsets = [16, 0], sizes = [8, 32], strides = [1, 1]} : vector<32x32xf32> to vector<8x32xf32>
    %cst_38 = arith.constant dense<0.000000e+00> : vector<6x32xf32>
    %91 = tpu.matmul %89, %90, %cst_38 {dimension_numbers = #tpu.dot_dimension_numbers<[1], [0], [0], [1], [0, 0, 1, 1], [], []>} : vector<6x8xf32>, vector<8x32xf32>, vector<6x32xf32> -> vector<6x32xf32>
    %92 = arith.addf %73, %91 : vector<6x32xf32>
    %93 = vector.extract_strided_slice %32 {offsets = [0, 24], sizes = [6, 8], strides = [1, 1]} : vector<6x96xf32> to vector<6x8xf32>
    %94 = vector.extract_strided_slice %32 {offsets = [0, 56], sizes = [6, 8], strides = [1, 1]} : vector<6x96xf32> to vector<6x8xf32>
    %95 = vector.extract_strided_slice %32 {offsets = [0, 88], sizes = [6, 8], strides = [1, 1]} : vector<6x96xf32> to vector<6x8xf32>
    %cst_39 = arith.constant dense<0.000000e+00> : vector<6x6xf32>
    %96 = tpu.matmul %93, %94, %cst_39 {dimension_numbers = #tpu.dot_dimension_numbers<[1], [1], [0], [0], [0, 0, 1, 0], [], []>} : vector<6x8xf32>, vector<6x8xf32>, vector<6x6xf32> -> vector<6x6xf32>
    %97 = arith.addf %96, %1 : vector<6x6xf32>
    %cst_40 = arith.constant dense<0xFF800000> : vector<6xf32>
    %98 = vector.multi_reduction <maximumf>, %97, %cst_40 [1] : vector<6x6xf32> to vector<6xf32>
    %99 = vector.shape_cast %98 : vector<6xf32> to vector<6x1xf32>
    %100 = vector.broadcast %99 : vector<6x1xf32> to vector<6x6xf32>
    %101 = arith.subf %97, %100 : vector<6x6xf32>
    %102 = math.exp %101 : vector<6x6xf32>
    %cst_41 = arith.constant dense<0.000000e+00> : vector<6xf32>
    %103 = vector.multi_reduction <add>, %102, %cst_41 [1] : vector<6x6xf32> to vector<6xf32>
    %104 = vector.shape_cast %103 : vector<6xf32> to vector<6x1xf32>
    %105 = tpu.reciprocal %104 {approx = true} : vector<6x1xf32> -> vector<6x1xf32>
    %106 = vector.broadcast %105 : vector<6x1xf32> to vector<6x6xf32>
    %107 = arith.mulf %102, %106 : vector<6x6xf32>
    %cst_42 = arith.constant dense<0.000000e+00> : vector<6x8xf32>
    %108 = tpu.matmul %107, %95, %cst_42 {dimension_numbers = #tpu.dot_dimension_numbers<[1], [0], [0], [1], [0, 0, 1, 1], [], []>} : vector<6x6xf32>, vector<6x8xf32>, vector<6x8xf32> -> vector<6x8xf32>
    %109 = vector.extract_strided_slice %34 {offsets = [24, 0], sizes = [8, 32], strides = [1, 1]} : vector<32x32xf32> to vector<8x32xf32>
    %cst_43 = arith.constant dense<0.000000e+00> : vector<6x32xf32>
    %110 = tpu.matmul %108, %109, %cst_43 {dimension_numbers = #tpu.dot_dimension_numbers<[1], [0], [0], [1], [0, 0, 1, 1], [], []>} : vector<6x8xf32>, vector<8x32xf32>, vector<6x32xf32> -> vector<6x32xf32>
    %111 = arith.addf %92, %110 : vector<6x32xf32>
    %112 = arith.addf %0, %111 : vector<6x32xf32>
    %c0_44 = arith.constant 0 : index
    %c0_45 = arith.constant 0 : index
    %c0_46 = arith.constant 0 : index
    %113 = vector.load %arg5[%c0_44, %c0_45, %c0_46] : memref<2x1x32xf32, #tpu.memory_space<vmem>>, vector<1x1x32xf32>
    %114 = vector.shape_cast %113 : vector<1x1x32xf32> to vector<1x32xf32>
    %115 = vector.broadcast %114 : vector<1x32xf32> to vector<6x32xf32>
    %116 = arith.addf %112, %115 : vector<6x32xf32>
    %c0_47 = arith.constant 0 : index
    %c0_48 = arith.constant 0 : index
    %c0_49 = arith.constant 0 : index
    %117 = vector.load %arg8[%c0_47, %c0_48, %c0_49] : memref<2x1x32xf32, #tpu.memory_space<vmem>>, vector<1x1x32xf32>
    %118 = vector.shape_cast %117 : vector<1x1x32xf32> to vector<1x32xf32>
    %c0_50 = arith.constant 0 : index
    %c0_51 = arith.constant 0 : index
    %c0_52 = arith.constant 0 : index
    %119 = vector.load %arg9[%c0_50, %c0_51, %c0_52] : memref<2x1x32xf32, #tpu.memory_space<vmem>>, vector<1x1x32xf32>
    %120 = vector.shape_cast %119 : vector<1x1x32xf32> to vector<1x32xf32>
    %cst_53 = arith.constant dense<0.000000e+00> : vector<6xf32>
    %121 = vector.multi_reduction <add>, %116, %cst_53 [1] : vector<6x32xf32> to vector<6xf32>
    %122 = vector.shape_cast %121 : vector<6xf32> to vector<6x1xf32>
    %cst_54 = arith.constant 3.200000e+01 : f32
    %123 = vector.broadcast %cst_54 : f32 to vector<6x1xf32>
    %124 = arith.divf %122, %123 : vector<6x1xf32>
    %125 = vector.broadcast %124 : vector<6x1xf32> to vector<6x32xf32>
    %126 = arith.subf %116, %125 : vector<6x32xf32>
    %127 = arith.mulf %126, %126 : vector<6x32xf32>
    %cst_55 = arith.constant dense<0.000000e+00> : vector<6xf32>
    %128 = vector.multi_reduction <add>, %127, %cst_55 [1] : vector<6x32xf32> to vector<6xf32>
    %129 = vector.shape_cast %128 : vector<6xf32> to vector<6x1xf32>
    %cst_56 = arith.constant 3.200000e+01 : f32
    %130 = vector.broadcast %cst_56 : f32 to vector<6x1xf32>
    %131 = arith.divf %129, %130 : vector<6x1xf32>
    %cst_57 = arith.constant 9.99999996E-13 : f32
    %132 = vector.broadcast %cst_57 : f32 to vector<6x1xf32>
    %133 = arith.addf %131, %132 : vector<6x1xf32>
    %134 = math.rsqrt %133 : vector<6x1xf32>
    %135 = vector.broadcast %134 : vector<6x1xf32> to vector<6x32xf32>
    %136 = arith.mulf %126, %135 : vector<6x32xf32>
    %137 = vector.broadcast %118 : vector<1x32xf32> to vector<6x32xf32>
    %138 = arith.mulf %136, %137 : vector<6x32xf32>
    %139 = vector.broadcast %120 : vector<1x32xf32> to vector<6x32xf32>
    %140 = arith.addf %138, %139 : vector<6x32xf32>
    %c0_58 = arith.constant 0 : index
    %c0_59 = arith.constant 0 : index
    %c0_60 = arith.constant 0 : index
    %141 = vector.load %arg10[%c0_58, %c0_59, %c0_60] : memref<2x32x64xf32, #tpu.memory_space<vmem>>, vector<1x32x64xf32>
    %142 = vector.shape_cast %141 : vector<1x32x64xf32> to vector<32x64xf32>
    %cst_61 = arith.constant dense<0.000000e+00> : vector<6x64xf32>
    %143 = tpu.matmul %140, %142, %cst_61 {dimension_numbers = #tpu.dot_dimension_numbers<[1], [0], [0], [1], [0, 0, 1, 1], [], []>} : vector<6x32xf32>, vector<32x64xf32>, vector<6x64xf32> -> vector<6x64xf32>
    %c0_62 = arith.constant 0 : index
    %c0_63 = arith.constant 0 : index
    %c0_64 = arith.constant 0 : index
    %144 = vector.load %arg11[%c0_62, %c0_63, %c0_64] : memref<2x1x64xf32, #tpu.memory_space<vmem>>, vector<1x1x64xf32>
    %145 = vector.shape_cast %144 : vector<1x1x64xf32> to vector<1x64xf32>
    %146 = vector.broadcast %145 : vector<1x64xf32> to vector<6x64xf32>
    %147 = arith.addf %143, %146 : vector<6x64xf32>
    %cst_65 = arith.constant 0.000000e+00 : f32
    %148 = vector.broadcast %cst_65 : f32 to vector<6x64xf32>
    %149 = arith.maximumf %147, %148 : vector<6x64xf32>
    %c0_66 = arith.constant 0 : index
    %c0_67 = arith.constant 0 : index
    %c0_68 = arith.constant 0 : index
    %150 = vector.load %arg12[%c0_66, %c0_67, %c0_68] : memref<2x64x32xf32, #tpu.memory_space<vmem>>, vector<1x64x32xf32>
    %151 = vector.shape_cast %150 : vector<1x64x32xf32> to vector<64x32xf32>
    %cst_69 = arith.constant dense<0.000000e+00> : vector<6x32xf32>
    %152 = tpu.matmul %149, %151, %cst_69 {dimension_numbers = #tpu.dot_dimension_numbers<[1], [0], [0], [1], [0, 0, 1, 1], [], []>} : vector<6x64xf32>, vector<64x32xf32>, vector<6x32xf32> -> vector<6x32xf32>
    %153 = arith.addf %116, %152 : vector<6x32xf32>
    %c0_70 = arith.constant 0 : index
    %c0_71 = arith.constant 0 : index
    %c0_72 = arith.constant 0 : index
    %154 = vector.load %arg13[%c0_70, %c0_71, %c0_72] : memref<2x1x32xf32, #tpu.memory_space<vmem>>, vector<1x1x32xf32>
    %155 = vector.shape_cast %154 : vector<1x1x32xf32> to vector<1x32xf32>
    %156 = vector.broadcast %155 : vector<1x32xf32> to vector<6x32xf32>
    %157 = arith.addf %153, %156 : vector<6x32xf32>
    %c1 = arith.constant 1 : index
    %c0_73 = arith.constant 0 : index
    %c0_74 = arith.constant 0 : index
    %158 = vector.load %arg6[%c1, %c0_73, %c0_74] : memref<2x1x32xf32, #tpu.memory_space<vmem>>, vector<1x1x32xf32>
    %159 = vector.shape_cast %158 : vector<1x1x32xf32> to vector<1x32xf32>
    %c1_75 = arith.constant 1 : index
    %c0_76 = arith.constant 0 : index
    %c0_77 = arith.constant 0 : index
    %160 = vector.load %arg7[%c1_75, %c0_76, %c0_77] : memref<2x1x32xf32, #tpu.memory_space<vmem>>, vector<1x1x32xf32>
    %161 = vector.shape_cast %160 : vector<1x1x32xf32> to vector<1x32xf32>
    %cst_78 = arith.constant dense<0.000000e+00> : vector<6xf32>
    %162 = vector.multi_reduction <add>, %157, %cst_78 [1] : vector<6x32xf32> to vector<6xf32>
    %163 = vector.shape_cast %162 : vector<6xf32> to vector<6x1xf32>
    %cst_79 = arith.constant 3.200000e+01 : f32
    %164 = vector.broadcast %cst_79 : f32 to vector<6x1xf32>
    %165 = arith.divf %163, %164 : vector<6x1xf32>
    %166 = vector.broadcast %165 : vector<6x1xf32> to vector<6x32xf32>
    %167 = arith.subf %157, %166 : vector<6x32xf32>
    %168 = arith.mulf %167, %167 : vector<6x32xf32>
    %cst_80 = arith.constant dense<0.000000e+00> : vector<6xf32>
    %169 = vector.multi_reduction <add>, %168, %cst_80 [1] : vector<6x32xf32> to vector<6xf32>
    %170 = vector.shape_cast %169 : vector<6xf32> to vector<6x1xf32>
    %cst_81 = arith.constant 3.200000e+01 : f32
    %171 = vector.broadcast %cst_81 : f32 to vector<6x1xf32>
    %172 = arith.divf %170, %171 : vector<6x1xf32>
    %cst_82 = arith.constant 9.99999996E-13 : f32
    %173 = vector.broadcast %cst_82 : f32 to vector<6x1xf32>
    %174 = arith.addf %172, %173 : vector<6x1xf32>
    %175 = math.rsqrt %174 : vector<6x1xf32>
    %176 = vector.broadcast %175 : vector<6x1xf32> to vector<6x32xf32>
    %177 = arith.mulf %167, %176 : vector<6x32xf32>
    %178 = vector.broadcast %159 : vector<1x32xf32> to vector<6x32xf32>
    %179 = arith.mulf %177, %178 : vector<6x32xf32>
    %180 = vector.broadcast %161 : vector<1x32xf32> to vector<6x32xf32>
    %181 = arith.addf %179, %180 : vector<6x32xf32>
    %c1_83 = arith.constant 1 : index
    %c0_84 = arith.constant 0 : index
    %c0_85 = arith.constant 0 : index
    %182 = vector.load %arg2[%c1_83, %c0_84, %c0_85] : memref<2x32x96xf32, #tpu.memory_space<vmem>>, vector<1x32x96xf32>
    %183 = vector.shape_cast %182 : vector<1x32x96xf32> to vector<32x96xf32>
    %cst_86 = arith.constant dense<0.000000e+00> : vector<6x96xf32>
    %184 = tpu.matmul %181, %183, %cst_86 {dimension_numbers = #tpu.dot_dimension_numbers<[1], [0], [0], [1], [0, 0, 1, 1], [], []>} : vector<6x32xf32>, vector<32x96xf32>, vector<6x96xf32> -> vector<6x96xf32>
    %c1_87 = arith.constant 1 : index
    %c0_88 = arith.constant 0 : index
    %c0_89 = arith.constant 0 : index
    %185 = vector.load %arg3[%c1_87, %c0_88, %c0_89] : memref<2x1x96xf32, #tpu.memory_space<vmem>>, vector<1x1x96xf32>
    %186 = vector.shape_cast %185 : vector<1x1x96xf32> to vector<1x96xf32>
    %187 = vector.broadcast %186 : vector<1x96xf32> to vector<6x96xf32>
    %188 = arith.addf %184, %187 : vector<6x96xf32>
    %c1_90 = arith.constant 1 : index
    %c0_91 = arith.constant 0 : index
    %c0_92 = arith.constant 0 : index
    %189 = vector.load %arg4[%c1_90, %c0_91, %c0_92] : memref<2x32x32xf32, #tpu.memory_space<vmem>>, vector<1x32x32xf32>
    %190 = vector.shape_cast %189 : vector<1x32x32xf32> to vector<32x32xf32>
    %cst_93 = arith.constant 0.000000e+00 : f32
    %191 = vector.broadcast %cst_93 : f32 to vector<6x32xf32>
    %192 = vector.extract_strided_slice %188 {offsets = [0, 0], sizes = [6, 8], strides = [1, 1]} : vector<6x96xf32> to vector<6x8xf32>
    %193 = vector.extract_strided_slice %188 {offsets = [0, 32], sizes = [6, 8], strides = [1, 1]} : vector<6x96xf32> to vector<6x8xf32>
    %194 = vector.extract_strided_slice %188 {offsets = [0, 64], sizes = [6, 8], strides = [1, 1]} : vector<6x96xf32> to vector<6x8xf32>
    %cst_94 = arith.constant dense<0.000000e+00> : vector<6x6xf32>
    %195 = tpu.matmul %192, %193, %cst_94 {dimension_numbers = #tpu.dot_dimension_numbers<[1], [1], [0], [0], [0, 0, 1, 0], [], []>} : vector<6x8xf32>, vector<6x8xf32>, vector<6x6xf32> -> vector<6x6xf32>
    %196 = arith.addf %195, %1 : vector<6x6xf32>
    %cst_95 = arith.constant dense<0xFF800000> : vector<6xf32>
    %197 = vector.multi_reduction <maximumf>, %196, %cst_95 [1] : vector<6x6xf32> to vector<6xf32>
    %198 = vector.shape_cast %197 : vector<6xf32> to vector<6x1xf32>
    %199 = vector.broadcast %198 : vector<6x1xf32> to vector<6x6xf32>
    %200 = arith.subf %196, %199 : vector<6x6xf32>
    %201 = math.exp %200 : vector<6x6xf32>
    %cst_96 = arith.constant dense<0.000000e+00> : vector<6xf32>
    %202 = vector.multi_reduction <add>, %201, %cst_96 [1] : vector<6x6xf32> to vector<6xf32>
    %203 = vector.shape_cast %202 : vector<6xf32> to vector<6x1xf32>
    %204 = tpu.reciprocal %203 {approx = true} : vector<6x1xf32> -> vector<6x1xf32>
    %205 = vector.broadcast %204 : vector<6x1xf32> to vector<6x6xf32>
    %206 = arith.mulf %201, %205 : vector<6x6xf32>
    %cst_97 = arith.constant dense<0.000000e+00> : vector<6x8xf32>
    %207 = tpu.matmul %206, %194, %cst_97 {dimension_numbers = #tpu.dot_dimension_numbers<[1], [0], [0], [1], [0, 0, 1, 1], [], []>} : vector<6x6xf32>, vector<6x8xf32>, vector<6x8xf32> -> vector<6x8xf32>
    %208 = vector.extract_strided_slice %190 {offsets = [0, 0], sizes = [8, 32], strides = [1, 1]} : vector<32x32xf32> to vector<8x32xf32>
    %cst_98 = arith.constant dense<0.000000e+00> : vector<6x32xf32>
    %209 = tpu.matmul %207, %208, %cst_98 {dimension_numbers = #tpu.dot_dimension_numbers<[1], [0], [0], [1], [0, 0, 1, 1], [], []>} : vector<6x8xf32>, vector<8x32xf32>, vector<6x32xf32> -> vector<6x32xf32>
    %210 = arith.addf %191, %209 : vector<6x32xf32>
    %211 = vector.extract_strided_slice %188 {offsets = [0, 8], sizes = [6, 8], strides = [1, 1]} : vector<6x96xf32> to vector<6x8xf32>
    %212 = vector.extract_strided_slice %188 {offsets = [0, 40], sizes = [6, 8], strides = [1, 1]} : vector<6x96xf32> to vector<6x8xf32>
    %213 = vector.extract_strided_slice %188 {offsets = [0, 72], sizes = [6, 8], strides = [1, 1]} : vector<6x96xf32> to vector<6x8xf32>
    %cst_99 = arith.constant dense<0.000000e+00> : vector<6x6xf32>
    %214 = tpu.matmul %211, %212, %cst_99 {dimension_numbers = #tpu.dot_dimension_numbers<[1], [1], [0], [0], [0, 0, 1, 0], [], []>} : vector<6x8xf32>, vector<6x8xf32>, vector<6x6xf32> -> vector<6x6xf32>
    %215 = arith.addf %214, %1 : vector<6x6xf32>
    %cst_100 = arith.constant dense<0xFF800000> : vector<6xf32>
    %216 = vector.multi_reduction <maximumf>, %215, %cst_100 [1] : vector<6x6xf32> to vector<6xf32>
    %217 = vector.shape_cast %216 : vector<6xf32> to vector<6x1xf32>
    %218 = vector.broadcast %217 : vector<6x1xf32> to vector<6x6xf32>
    %219 = arith.subf %215, %218 : vector<6x6xf32>
    %220 = math.exp %219 : vector<6x6xf32>
    %cst_101 = arith.constant dense<0.000000e+00> : vector<6xf32>
    %221 = vector.multi_reduction <add>, %220, %cst_101 [1] : vector<6x6xf32> to vector<6xf32>
    %222 = vector.shape_cast %221 : vector<6xf32> to vector<6x1xf32>
    %223 = tpu.reciprocal %222 {approx = true} : vector<6x1xf32> -> vector<6x1xf32>
    %224 = vector.broadcast %223 : vector<6x1xf32> to vector<6x6xf32>
    %225 = arith.mulf %220, %224 : vector<6x6xf32>
    %cst_102 = arith.constant dense<0.000000e+00> : vector<6x8xf32>
    %226 = tpu.matmul %225, %213, %cst_102 {dimension_numbers = #tpu.dot_dimension_numbers<[1], [0], [0], [1], [0, 0, 1, 1], [], []>} : vector<6x6xf32>, vector<6x8xf32>, vector<6x8xf32> -> vector<6x8xf32>
    %227 = vector.extract_strided_slice %190 {offsets = [8, 0], sizes = [8, 32], strides = [1, 1]} : vector<32x32xf32> to vector<8x32xf32>
    %cst_103 = arith.constant dense<0.000000e+00> : vector<6x32xf32>
    %228 = tpu.matmul %226, %227, %cst_103 {dimension_numbers = #tpu.dot_dimension_numbers<[1], [0], [0], [1], [0, 0, 1, 1], [], []>} : vector<6x8xf32>, vector<8x32xf32>, vector<6x32xf32> -> vector<6x32xf32>
    %229 = arith.addf %210, %228 : vector<6x32xf32>
    %230 = vector.extract_strided_slice %188 {offsets = [0, 16], sizes = [6, 8], strides = [1, 1]} : vector<6x96xf32> to vector<6x8xf32>
    %231 = vector.extract_strided_slice %188 {offsets = [0, 48], sizes = [6, 8], strides = [1, 1]} : vector<6x96xf32> to vector<6x8xf32>
    %232 = vector.extract_strided_slice %188 {offsets = [0, 80], sizes = [6, 8], strides = [1, 1]} : vector<6x96xf32> to vector<6x8xf32>
    %cst_104 = arith.constant dense<0.000000e+00> : vector<6x6xf32>
    %233 = tpu.matmul %230, %231, %cst_104 {dimension_numbers = #tpu.dot_dimension_numbers<[1], [1], [0], [0], [0, 0, 1, 0], [], []>} : vector<6x8xf32>, vector<6x8xf32>, vector<6x6xf32> -> vector<6x6xf32>
    %234 = arith.addf %233, %1 : vector<6x6xf32>
    %cst_105 = arith.constant dense<0xFF800000> : vector<6xf32>
    %235 = vector.multi_reduction <maximumf>, %234, %cst_105 [1] : vector<6x6xf32> to vector<6xf32>
    %236 = vector.shape_cast %235 : vector<6xf32> to vector<6x1xf32>
    %237 = vector.broadcast %236 : vector<6x1xf32> to vector<6x6xf32>
    %238 = arith.subf %234, %237 : vector<6x6xf32>
    %239 = math.exp %238 : vector<6x6xf32>
    %cst_106 = arith.constant dense<0.000000e+00> : vector<6xf32>
    %240 = vector.multi_reduction <add>, %239, %cst_106 [1] : vector<6x6xf32> to vector<6xf32>
    %241 = vector.shape_cast %240 : vector<6xf32> to vector<6x1xf32>
    %242 = tpu.reciprocal %241 {approx = true} : vector<6x1xf32> -> vector<6x1xf32>
    %243 = vector.broadcast %242 : vector<6x1xf32> to vector<6x6xf32>
    %244 = arith.mulf %239, %243 : vector<6x6xf32>
    %cst_107 = arith.constant dense<0.000000e+00> : vector<6x8xf32>
    %245 = tpu.matmul %244, %232, %cst_107 {dimension_numbers = #tpu.dot_dimension_numbers<[1], [0], [0], [1], [0, 0, 1, 1], [], []>} : vector<6x6xf32>, vector<6x8xf32>, vector<6x8xf32> -> vector<6x8xf32>
    %246 = vector.extract_strided_slice %190 {offsets = [16, 0], sizes = [8, 32], strides = [1, 1]} : vector<32x32xf32> to vector<8x32xf32>
    %cst_108 = arith.constant dense<0.000000e+00> : vector<6x32xf32>
    %247 = tpu.matmul %245, %246, %cst_108 {dimension_numbers = #tpu.dot_dimension_numbers<[1], [0], [0], [1], [0, 0, 1, 1], [], []>} : vector<6x8xf32>, vector<8x32xf32>, vector<6x32xf32> -> vector<6x32xf32>
    %248 = arith.addf %229, %247 : vector<6x32xf32>
    %249 = vector.extract_strided_slice %188 {offsets = [0, 24], sizes = [6, 8], strides = [1, 1]} : vector<6x96xf32> to vector<6x8xf32>
    %250 = vector.extract_strided_slice %188 {offsets = [0, 56], sizes = [6, 8], strides = [1, 1]} : vector<6x96xf32> to vector<6x8xf32>
    %251 = vector.extract_strided_slice %188 {offsets = [0, 88], sizes = [6, 8], strides = [1, 1]} : vector<6x96xf32> to vector<6x8xf32>
    %cst_109 = arith.constant dense<0.000000e+00> : vector<6x6xf32>
    %252 = tpu.matmul %249, %250, %cst_109 {dimension_numbers = #tpu.dot_dimension_numbers<[1], [1], [0], [0], [0, 0, 1, 0], [], []>} : vector<6x8xf32>, vector<6x8xf32>, vector<6x6xf32> -> vector<6x6xf32>
    %253 = arith.addf %252, %1 : vector<6x6xf32>
    %cst_110 = arith.constant dense<0xFF800000> : vector<6xf32>
    %254 = vector.multi_reduction <maximumf>, %253, %cst_110 [1] : vector<6x6xf32> to vector<6xf32>
    %255 = vector.shape_cast %254 : vector<6xf32> to vector<6x1xf32>
    %256 = vector.broadcast %255 : vector<6x1xf32> to vector<6x6xf32>
    %257 = arith.subf %253, %256 : vector<6x6xf32>
    %258 = math.exp %257 : vector<6x6xf32>
    %cst_111 = arith.constant dense<0.000000e+00> : vector<6xf32>
    %259 = vector.multi_reduction <add>, %258, %cst_111 [1] : vector<6x6xf32> to vector<6xf32>
    %260 = vector.shape_cast %259 : vector<6xf32> to vector<6x1xf32>
    %261 = tpu.reciprocal %260 {approx = true} : vector<6x1xf32> -> vector<6x1xf32>
    %262 = vector.broadcast %261 : vector<6x1xf32> to vector<6x6xf32>
    %263 = arith.mulf %258, %262 : vector<6x6xf32>
    %cst_112 = arith.constant dense<0.000000e+00> : vector<6x8xf32>
    %264 = tpu.matmul %263, %251, %cst_112 {dimension_numbers = #tpu.dot_dimension_numbers<[1], [0], [0], [1], [0, 0, 1, 1], [], []>} : vector<6x6xf32>, vector<6x8xf32>, vector<6x8xf32> -> vector<6x8xf32>
    %265 = vector.extract_strided_slice %190 {offsets = [24, 0], sizes = [8, 32], strides = [1, 1]} : vector<32x32xf32> to vector<8x32xf32>
    %cst_113 = arith.constant dense<0.000000e+00> : vector<6x32xf32>
    %266 = tpu.matmul %264, %265, %cst_113 {dimension_numbers = #tpu.dot_dimension_numbers<[1], [0], [0], [1], [0, 0, 1, 1], [], []>} : vector<6x8xf32>, vector<8x32xf32>, vector<6x32xf32> -> vector<6x32xf32>
    %267 = arith.addf %248, %266 : vector<6x32xf32>
    %268 = arith.addf %157, %267 : vector<6x32xf32>
    %c1_114 = arith.constant 1 : index
    %c0_115 = arith.constant 0 : index
    %c0_116 = arith.constant 0 : index
    %269 = vector.load %arg5[%c1_114, %c0_115, %c0_116] : memref<2x1x32xf32, #tpu.memory_space<vmem>>, vector<1x1x32xf32>
    %270 = vector.shape_cast %269 : vector<1x1x32xf32> to vector<1x32xf32>
    %271 = vector.broadcast %270 : vector<1x32xf32> to vector<6x32xf32>
    %272 = arith.addf %268, %271 : vector<6x32xf32>
    %c1_117 = arith.constant 1 : index
    %c0_118 = arith.constant 0 : index
    %c0_119 = arith.constant 0 : index
    %273 = vector.load %arg8[%c1_117, %c0_118, %c0_119] : memref<2x1x32xf32, #tpu.memory_space<vmem>>, vector<1x1x32xf32>
    %274 = vector.shape_cast %273 : vector<1x1x32xf32> to vector<1x32xf32>
    %c1_120 = arith.constant 1 : index
    %c0_121 = arith.constant 0 : index
    %c0_122 = arith.constant 0 : index
    %275 = vector.load %arg9[%c1_120, %c0_121, %c0_122] : memref<2x1x32xf32, #tpu.memory_space<vmem>>, vector<1x1x32xf32>
    %276 = vector.shape_cast %275 : vector<1x1x32xf32> to vector<1x32xf32>
    %cst_123 = arith.constant dense<0.000000e+00> : vector<6xf32>
    %277 = vector.multi_reduction <add>, %272, %cst_123 [1] : vector<6x32xf32> to vector<6xf32>
    %278 = vector.shape_cast %277 : vector<6xf32> to vector<6x1xf32>
    %cst_124 = arith.constant 3.200000e+01 : f32
    %279 = vector.broadcast %cst_124 : f32 to vector<6x1xf32>
    %280 = arith.divf %278, %279 : vector<6x1xf32>
    %281 = vector.broadcast %280 : vector<6x1xf32> to vector<6x32xf32>
    %282 = arith.subf %272, %281 : vector<6x32xf32>
    %283 = arith.mulf %282, %282 : vector<6x32xf32>
    %cst_125 = arith.constant dense<0.000000e+00> : vector<6xf32>
    %284 = vector.multi_reduction <add>, %283, %cst_125 [1] : vector<6x32xf32> to vector<6xf32>
    %285 = vector.shape_cast %284 : vector<6xf32> to vector<6x1xf32>
    %cst_126 = arith.constant 3.200000e+01 : f32
    %286 = vector.broadcast %cst_126 : f32 to vector<6x1xf32>
    %287 = arith.divf %285, %286 : vector<6x1xf32>
    %cst_127 = arith.constant 9.99999996E-13 : f32
    %288 = vector.broadcast %cst_127 : f32 to vector<6x1xf32>
    %289 = arith.addf %287, %288 : vector<6x1xf32>
    %290 = math.rsqrt %289 : vector<6x1xf32>
    %291 = vector.broadcast %290 : vector<6x1xf32> to vector<6x32xf32>
    %292 = arith.mulf %282, %291 : vector<6x32xf32>
    %293 = vector.broadcast %274 : vector<1x32xf32> to vector<6x32xf32>
    %294 = arith.mulf %292, %293 : vector<6x32xf32>
    %295 = vector.broadcast %276 : vector<1x32xf32> to vector<6x32xf32>
    %296 = arith.addf %294, %295 : vector<6x32xf32>
    %c1_128 = arith.constant 1 : index
    %c0_129 = arith.constant 0 : index
    %c0_130 = arith.constant 0 : index
    %297 = vector.load %arg10[%c1_128, %c0_129, %c0_130] : memref<2x32x64xf32, #tpu.memory_space<vmem>>, vector<1x32x64xf32>
    %298 = vector.shape_cast %297 : vector<1x32x64xf32> to vector<32x64xf32>
    %cst_131 = arith.constant dense<0.000000e+00> : vector<6x64xf32>
    %299 = tpu.matmul %296, %298, %cst_131 {dimension_numbers = #tpu.dot_dimension_numbers<[1], [0], [0], [1], [0, 0, 1, 1], [], []>} : vector<6x32xf32>, vector<32x64xf32>, vector<6x64xf32> -> vector<6x64xf32>
    %c1_132 = arith.constant 1 : index
    %c0_133 = arith.constant 0 : index
    %c0_134 = arith.constant 0 : index
    %300 = vector.load %arg11[%c1_132, %c0_133, %c0_134] : memref<2x1x64xf32, #tpu.memory_space<vmem>>, vector<1x1x64xf32>
    %301 = vector.shape_cast %300 : vector<1x1x64xf32> to vector<1x64xf32>
    %302 = vector.broadcast %301 : vector<1x64xf32> to vector<6x64xf32>
    %303 = arith.addf %299, %302 : vector<6x64xf32>
    %cst_135 = arith.constant 0.000000e+00 : f32
    %304 = vector.broadcast %cst_135 : f32 to vector<6x64xf32>
    %305 = arith.maximumf %303, %304 : vector<6x64xf32>
    %c1_136 = arith.constant 1 : index
    %c0_137 = arith.constant 0 : index
    %c0_138 = arith.constant 0 : index
    %306 = vector.load %arg12[%c1_136, %c0_137, %c0_138] : memref<2x64x32xf32, #tpu.memory_space<vmem>>, vector<1x64x32xf32>
    %307 = vector.shape_cast %306 : vector<1x64x32xf32> to vector<64x32xf32>
    %cst_139 = arith.constant dense<0.000000e+00> : vector<6x32xf32>
    %308 = tpu.matmul %305, %307, %cst_139 {dimension_numbers = #tpu.dot_dimension_numbers<[1], [0], [0], [1], [0, 0, 1, 1], [], []>} : vector<6x64xf32>, vector<64x32xf32>, vector<6x32xf32> -> vector<6x32xf32>
    %309 = arith.addf %272, %308 : vector<6x32xf32>
    %c1_140 = arith.constant 1 : index
    %c0_141 = arith.constant 0 : index
    %c0_142 = arith.constant 0 : index
    %310 = vector.load %arg13[%c1_140, %c0_141, %c0_142] : memref<2x1x32xf32, #tpu.memory_space<vmem>>, vector<1x1x32xf32>
    %311 = vector.shape_cast %310 : vector<1x1x32xf32> to vector<1x32xf32>
    %312 = vector.broadcast %311 : vector<1x32xf32> to vector<6x32xf32>
    %313 = arith.addf %309, %312 : vector<6x32xf32>
    %c0_143 = arith.constant 0 : index
    %c0_144 = arith.constant 0 : index
    %314 = vector.load %arg14[%c0_143, %c0_144] : memref<1x32xf32, #tpu.memory_space<vmem>>, vector<1x32xf32>
    %c0_145 = arith.constant 0 : index
    %c0_146 = arith.constant 0 : index
    %315 = vector.load %arg15[%c0_145, %c0_146] : memref<1x32xf32, #tpu.memory_space<vmem>>, vector<1x32xf32>
    %cst_147 = arith.constant dense<0.000000e+00> : vector<6xf32>
    %316 = vector.multi_reduction <add>, %313, %cst_147 [1] : vector<6x32xf32> to vector<6xf32>
    %317 = vector.shape_cast %316 : vector<6xf32> to vector<6x1xf32>
    %cst_148 = arith.constant 3.200000e+01 : f32
    %318 = vector.broadcast %cst_148 : f32 to vector<6x1xf32>
    %319 = arith.divf %317, %318 : vector<6x1xf32>
    %320 = vector.broadcast %319 : vector<6x1xf32> to vector<6x32xf32>
    %321 = arith.subf %313, %320 : vector<6x32xf32>
    %322 = arith.mulf %321, %321 : vector<6x32xf32>
    %cst_149 = arith.constant dense<0.000000e+00> : vector<6xf32>
    %323 = vector.multi_reduction <add>, %322, %cst_149 [1] : vector<6x32xf32> to vector<6xf32>
    %324 = vector.shape_cast %323 : vector<6xf32> to vector<6x1xf32>
    %cst_150 = arith.constant 3.200000e+01 : f32
    %325 = vector.broadcast %cst_150 : f32 to vector<6x1xf32>
    %326 = arith.divf %324, %325 : vector<6x1xf32>
    %cst_151 = arith.constant 9.99999996E-13 : f32
    %327 = vector.broadcast %cst_151 : f32 to vector<6x1xf32>
    %328 = arith.addf %326, %327 : vector<6x1xf32>
    %329 = math.rsqrt %328 : vector<6x1xf32>
    %330 = vector.broadcast %329 : vector<6x1xf32> to vector<6x32xf32>
    %331 = arith.mulf %321, %330 : vector<6x32xf32>
    %332 = vector.broadcast %314 : vector<1x32xf32> to vector<6x32xf32>
    %333 = arith.mulf %331, %332 : vector<6x32xf32>
    %334 = vector.broadcast %315 : vector<1x32xf32> to vector<6x32xf32>
    %335 = arith.addf %333, %334 : vector<6x32xf32>
    %c0_152 = arith.constant 0 : index
    %c0_153 = arith.constant 0 : index
    %336 = vector.load %arg16[%c0_152, %c0_153] : memref<6x32xf32, #tpu.memory_space<vmem>>, vector<6x32xf32>
    tpu.vector_store %arg16[%c0_152, %c0_153], %335 {strides = array<i32>} : memref<6x32xf32, #tpu.memory_space<vmem>>, vector<6x32xf32>,
    return
  }
}

</mosaic_0001>

<bundles_post_ra>
// kernel: espnet_encode.3
= control target key start
LH: loop header
LB: loop body
LE: loop exit
PB: predicated region body
PF: predicated region fallthrough
CT: control target
= control target key end

     0   :  { %vm134_vm0 = vcmask 1040384   ;;  %v379_v0 = vmov 0.0   ;;  %vm380_vm1 = vmmov 0   ;;  %vm94_vm2 = vcmask 72704   ;;  %s646_s3 = inlined_call_operand.vmem [shape: f32[9,32], index: 3, kind: input, shape index: {}]   ;;  %s647_s0 = inlined_call_operand.vmem [shape: f32[98,9], index: 0, kind: input, shape index: {}]   ;;  %s648_s1 = inlined_call_operand.vmem [shape: f32[98,9], index: 1, kind: input, shape index: {}]   ;;  %s649_s2 = inlined_call_operand.vmem [shape: f32[98,9], index: 2, kind: input, shape index: {}]   ;;  %s650_s4 = inlined_call_operand.vmem [shape: f32[1,32], index: 4, kind: input, shape index: {}]   ;;  %s651_s5 = inlined_call_operand.vmem [shape: f32[98,32], index: 5, kind: output, shape index: {}]  }
   0x1   :  { %330 = vmatprep.subr.mxu0 %v379_v0  ;;  %v86_v1 = vld [vmem:[%s646_s3 + $0x8] sm:$0x1]  ;;  %373 = vmatprep.subr.mxu1 %v379_v0  ;;  %v85_v2 = vld [vmem:[%s646_s3] sm:$0xff]  ;;  %v27_v6 = vld [vmem:[%s647_s0 + $0x38] sm:$0xff]  ;;  %vm281_vm3 = vcmask 261120   ;;  %vm294_vm4 = vcmask 254976  }
   0x2   :  { %v20_v3 = vld [vmem:[%s647_s0] sm:$0xff]  ;;  %331 = vmatpush3.msk.msra.mxu0 %vm134_vm0, %v86_v1  ;;  %375 = vmatpush3.msk.msra.mxu1 %vm134_vm0, %v86_v1  ;;  %v40_v8 = vld [vmem:[%s648_s1 + $0x38] sm:$0xff]  ;;  %v21_v10 = vld [vmem:[%s647_s0 + $0x8] sm:$0xff] }
   0x3   :  { %v33_v4 = vld [vmem:[%s648_s1] sm:$0xff]  ;;  %332 = vmatprep.subr.mxu0 %v379_v0  ;;  %334 = vmatprep.mubr.msk.f32.mxu0 %vm380_vm1, %v379_v0  ;;  %v66_v9 = vld [vmem:[%s649_s2 + $0x38] sm:$0xff]  ;;  %v53_v11 = vsub.f32 %v27_v6, %v40_v8  ;;  %v34_v12 = vld [vmem:[%s648_s1 + $0x8] sm:$0xff] }
   0x4   :  { %v59_v5 = vld [vmem:[%s649_s2] sm:$0xff]  ;;  %v46_v7 = vsub.f32 %v20_v3, %v33_v4  ;;  %333 = vmatpush3.msra.mxu0 %v85_v2  ;;  %374 = vmatprep.subr.mxu1 %v379_v0  ;;  %v60_v13 = vld [vmem:[%s649_s2 + $0x8] sm:$0xff]  ;;  %v47_v16 = vsub.f32 %v21_v10, %v34_v12  ;;  %v22_v19 = vld [vmem:[%s647_s0 + $0x10] sm:$0xff] }
   0x5   :  { %v28_v14 = vld [vmem:[%s647_s0 + $0x40] sm:$0xff]  ;;  %376 = vmatpush3.msra.mxu1 %v85_v2  ;;  %355 = vmatprep.mubr.msk.f32.mxu1 %vm380_vm1, %v379_v0  ;;  %v79_v20 = vmul.f32 %v66_v9, %v53_v11  ;;  %v35_v22 = vld [vmem:[%s648_s1 + $0x10] sm:$0xff]  ;;  %v29_v23 = vld [vmem:[%s647_s0 + $0x48] sm:$0xff] }
   0x6   :  { %v72_v15 = vmul.f32 %v59_v5, %v46_v7  ;;  %v41_v17 = vld [vmem:[%s648_s1 + $0x40] sm:$0xff]  ;;  %v73_v24 = vmul.f32 %v60_v13, %v47_v16  ;;  %v48_v25 = vsub.f32 %v22_v19, %v35_v22  ;;  %v42_v26 = vld [vmem:[%s648_s1 + $0x48] sm:$0xff]  ;;  %v61_v28 = vld [vmem:[%s649_s2 + $0x10] sm:$0xff] }
   0x7   :  { %v67_v18 = vld [vmem:[%s649_s2 + $0x40] sm:$0xff]  ;;  %v54_v21 = vsub.f32 %v28_v14, %v41_v17  ;;  %356 = vmatmul.mubr.msk.f32.vlgmr.msra.gmra.mxu1 %vm94_vm2, %v79_v20  ;;  %v55_v29 = vsub.f32 %v29_v23, %v42_v26  ;;  %v23_v30 = vld [vmem:[%s647_s0 + $0x18] sm:$0xff]  ;;  %v68_v32 = vld [vmem:[%s649_s2 + $0x48] sm:$0xff] }
   0x8   :  { %335 = vmatmul.mubr.msk.f32.vlgmr.msra.gmra.mxu0 %vm94_vm2, %v72_v15  ;;  %v36_v31 = vld [vmem:[%s648_s1 + $0x18] sm:$0xff]  ;;  %358 = vmatprep.mubr.msk.f32.mxu1 %vm380_vm1, %v379_v0  ;;  %v30_v33 = vld [vmem:[%s647_s0 + $0x50] sm:$0xff]  ;;  %v74_v35 = vmul.f32 %v61_v28, %v48_v25  ;;  %v24_v40 = vld [vmem:[%s647_s0 + $0x20] sm:$0xff] }
   0x9   :  { %337 = vmatprep.mubr.msk.f32.mxu0 %vm380_vm1, %v379_v0  ;;  %v80_v27 = vmul.f32 %v67_v18, %v54_v21  ;;  %v43_v34 = vld [vmem:[%s648_s1 + $0x50] sm:$0xff]  ;;  %v49_v36 = vsub.f32 %v23_v30, %v36_v31  ;;  %v81_v37 = vmul.f32 %v68_v32, %v55_v29  ;;  %v62_v38 = vld [vmem:[%s649_s2 + $0x18] sm:$0xff]  ;;  %v37_v41 = vld [vmem:[%s648_s1 + $0x20] sm:$0xff] }
   0xa   :  { %v56_v39 = vsub.f32 %v30_v33, %v43_v34  ;;  %v69_v42 = vld [vmem:[%s649_s2 + $0x50] sm:$0xff]  ;;  %v31_v43 = vld [vmem:[%s647_s0 + $0x58] sm:$0xff]  ;;  %v50_v46 = vsub.f32 %v24_v40, %v37_v41  ;;  %v63_v48 = vld [vmem:[%s649_s2 + $0x20] sm:$0xff] }
   0xb   :  { %359 = vmatmul.mubr.msk.f32.gmra.mxu1 %vm94_vm2, %v80_v27  ;;  %v44_v44 = vld [vmem:[%s648_s1 + $0x58] sm:$0xff]  ;;  %v75_v45 = vmul.f32 %v62_v38, %v49_v36  ;;  %v25_v50 = vld [vmem:[%s647_s0 + $0x28] sm:$0xff]  ;;  %v32_v53 = vld [vmem:[%s647_s0 + $0x60] sm:$0x3] }
   0xc   :  { %338 = vmatmul.mubr.msk.f32.gmra.mxu0 %vm94_vm2, %v73_v24  ;;  %361 = vmatprep.mubr.msk.f32.mxu1 %vm380_vm1, %v379_v0  ;;  %v82_v47 = vmul.f32 %v69_v42, %v56_v39  ;;  %v57_v49 = vsub.f32 %v31_v43, %v44_v44  ;;  %v38_v51 = vld [vmem:[%s648_s1 + $0x28] sm:$0xff]  ;;  %v70_v52 = vld [vmem:[%s649_s2 + $0x58] sm:$0xff]  ;;  %v45_v54 = vld [vmem:[%s648_s1 + $0x60] sm:$0x3]  ;;  %v76_v55 = vmul.f32 %v63_v48, %v50_v46 }
   0xd   :  { %340 = vmatprep.mubr.msk.f32.mxu0 %vm380_vm1, %v379_v0  ;;  %v51_v56 = vsub.f32 %v25_v50, %v38_v51  ;;  %v64_v58 = vld [vmem:[%s649_s2 + $0x28] sm:$0xff]  ;;  %v58_v59 = vsub.f32 %v32_v53, %v45_v54  ;;  %v26_v60 = vld [vmem:[%s647_s0 + $0x30] sm:$0xff]  ;;  %v71_v62 = vld [vmem:[%s649_s2 + $0x60] sm:$0x3] }
   0xe   :  { %v83_v57 = vmul.f32 %v70_v52, %v57_v49  ;;  %v39_v61 = vld [vmem:[%s648_s1 + $0x30] sm:$0xff]  ;;  %v580_v5 = vld [vmem:[%s650_s4] ss:$0 sm:$0xff] }
   0xf   :  { %362 = vmatmul.mubr.msk.f32.gmra.mxu1 %vm94_vm2, %v81_v37  ;;  %v77_v63 = vmul.f32 %v64_v58, %v51_v56  ;;  %v52_v1 = vsub.f32 %v26_v60, %v39_v61  ;;  %v84_v2 = vmul.f32 %v71_v62, %v58_v59  ;;  %v65_v3 = vld [vmem:[%s649_s2 + $0x30] sm:$0xff] }
  0x10   :  { %341 = vmatmul.mubr.msk.f32.gmra.mxu0 %vm94_vm2, %v74_v35  ;;  %364 = vmatprep.mubr.msk.f32.mxu1 %vm380_vm1, %v379_v0 }
  0x11   :  { %343 = vmatprep.mubr.msk.f32.mxu0 %vm380_vm1, %v379_v0  ;;  %v78_v4 = vmul.f32 %v65_v3, %v52_v1 }
  0x13   :  { %365 = vmatmul.mubr.msk.f32.gmra.mxu1 %vm94_vm2, %v82_v47 }
  0x14   :  { %344 = vmatmul.mubr.msk.f32.gmra.mxu0 %vm94_vm2, %v75_v45  ;;  %367 = vmatprep.mubr.msk.f32.mxu1 %vm380_vm1, %v379_v0 }
  0x15   :  { %346 = vmatprep.mubr.msk.f32.mxu0 %vm380_vm1, %v379_v0 }
  0x17   :  { %368 = vmatmul.mubr.msk.f32.gmra.mxu1 %vm94_vm2, %v83_v57 }
  0x18   :  { %347 = vmatmul.mubr.msk.f32.gmra.mxu0 %vm94_vm2, %v76_v55  ;;  %370 = vmatprep.mubr.msk.f32.mxu1 %vm380_vm1, %v379_v0 }
  0x19   :  { %349 = vmatprep.mubr.msk.f32.mxu0 %vm380_vm1, %v379_v0 }
  0x1b   :  { %371 = vmatmul.mubr.msk.f32.gmra.mxu1 %vm94_vm2, %v84_v2 }
  0x1c   :  { %350 = vmatmul.mubr.msk.f32.gmra.mxu0 %vm94_vm2, %v77_v63 }
  0x1d   :  { %352 = vmatprep.mubr.msk.f32.mxu0 %vm380_vm1, %v379_v0 }
  0x20   :  { %353 = vmatmul.mubr.msk.f32.gmra.mxu0 %vm94_vm2, %v78_v4 }
  0xc7   :  { %v239_v8 = vpop.f32.mrf.mxu1 }
  0xc8   :  { %v204_v6 = vpop.f32.mrf.mxu0  ;;  %v240_v10 = vadd.f32 %v580_v5, %v239_v8 }
  0xc9   :  { %v205_v7 = vadd.f32 %v580_v5, %v204_v6  ;;  %v357_v12 = vpop.f32.mrf.mxu1 }
  0xca   :  { %v336_v9 = vpop.f32.mrf.mxu0  ;;  %v275_v13 = vmax.f32 %v240_v10, 0.0 }
  0xcb   :  { %v268_v11 = vmax.f32 %v205_v7, 0.0  ;;  %v244_v15 = vpop.f32.mrf.mxu1 }
  0xcc   :  { %v209_v14 = vpop.f32.mrf.mxu0  ;;  %289 = vst.msk [vmem:[%s651_s5 + $0x38] sm:$0xff] %vm281_vm3, %v275_v13  ;;  %v245_v17 = vadd.f32 %v580_v5, %v244_v15 }
  0xcd   :  { %282 = vst.msk [vmem:[%s651_s5] sm:$0xff] %vm281_vm3, %v268_v11  ;;  %v210_v0 = vadd.f32 %v580_v5, %v209_v14  ;;  %v360_v19 = vpop.f32.mrf.mxu1 }
  0xce   :  { %v339_v16 = vpop.f32.mrf.mxu0  ;;  %v276_v20 = vmax.f32 %v245_v17, 0.0 }
  0xcf   :  { %v269_v18 = vmax.f32 %v210_v0, 0.0  ;;  %v249_v23 = vpop.f32.mrf.mxu1 }
  0xd0   :  { %v214_v21 = vpop.f32.mrf.mxu0  ;;  %290 = vst.msk [vmem:[%s651_s5 + $0x40] sm:$0xff] %vm281_vm3, %v276_v20  ;;  %v250_v25 = vadd.f32 %v580_v5, %v249_v23 }
  0xd1   :  { %283 = vst.msk [vmem:[%s651_s5 + $0x8] sm:$0xff] %vm281_vm3, %v269_v18  ;;  %v215_v22 = vadd.f32 %v580_v5, %v214_v21  ;;  %v363_v27 = vpop.f32.mrf.mxu1 }
  0xd2   :  { %v342_v24 = vpop.f32.mrf.mxu0  ;;  %v277_v28 = vmax.f32 %v250_v25, 0.0 }
  0xd3   :  { %v270_v26 = vmax.f32 %v215_v22, 0.0  ;;  %v254_v31 = vpop.f32.mrf.mxu1 }
  0xd4   :  { %v219_v29 = vpop.f32.mrf.mxu0  ;;  %291 = vst.msk [vmem:[%s651_s5 + $0x48] sm:$0xff] %vm281_vm3, %v277_v28  ;;  %v255_v33 = vadd.f32 %v580_v5, %v254_v31 }
  0xd5   :  { %284 = vst.msk [vmem:[%s651_s5 + $0x10] sm:$0xff] %vm281_vm3, %v270_v26  ;;  %v220_v30 = vadd.f32 %v580_v5, %v219_v29  ;;  %v366_v35 = vpop.f32.mrf.mxu1 }
  0xd6   :  { %v345_v32 = vpop.f32.mrf.mxu0  ;;  %v278_v36 = vmax.f32 %v255_v33, 0.0 }
  0xd7   :  { %v271_v34 = vmax.f32 %v220_v30, 0.0  ;;  %v259_v39 = vpop.f32.mrf.mxu1 }
  0xd8   :  { %v224_v37 = vpop.f32.mrf.mxu0  ;;  %292 = vst.msk [vmem:[%s651_s5 + $0x50] sm:$0xff] %vm281_vm3, %v278_v36  ;;  %v260_v41 = vadd.f32 %v580_v5, %v259_v39 }
  0xd9   :  { %285 = vst.msk [vmem:[%s651_s5 + $0x18] sm:$0xff] %vm281_vm3, %v271_v34  ;;  %v225_v38 = vadd.f32 %v580_v5, %v224_v37  ;;  %v369_v43 = vpop.f32.mrf.mxu1 }
  0xda   :  { %v348_v40 = vpop.f32.mrf.mxu0  ;;  %v279_v44 = vmax.f32 %v260_v41, 0.0 }
  0xdb   :  { %v272_v42 = vmax.f32 %v225_v38, 0.0  ;;  %v264_v47 = vpop.f32.mrf.mxu1 }
  0xdc   :  { %v229_v45 = vpop.f32.mrf.mxu0  ;;  %293 = vst.msk [vmem:[%s651_s5 + $0x58] sm:$0xff] %vm281_vm3, %v279_v44  ;;  %v265_v49 = vadd.f32 %v580_v5, %v264_v47 }
  0xdd   :  { %286 = vst.msk [vmem:[%s651_s5 + $0x20] sm:$0xff] %vm281_vm3, %v272_v42  ;;  %v230_v46 = vadd.f32 %v580_v5, %v229_v45  ;;  %v372_v51 = vpop.f32.mrf.mxu1 }
  0xde   :  { %v351_v48 = vpop.f32.mrf.mxu0  ;;  %v280_v52 = vmax.f32 %v265_v49, 0.0 }
  0xdf   :  { %v273_v50 = vmax.f32 %v230_v46, 0.0 }
  0xe0   :  { %v234_v53 = vpop.f32.mrf.mxu0  ;;  %295 = vst.msk [vmem:[%s651_s5 + $0x60] sm:$0x3] %vm294_vm4, %v280_v52 }
  0xe1   :  { %287 = vst.msk [vmem:[%s651_s5 + $0x28] sm:$0xff] %vm281_vm3, %v273_v50  ;;  %v235_v54 = vadd.f32 %v580_v5, %v234_v53 }
  0xe2   :  { %v354_v55 = vpop.f32.mrf.mxu0 }
  0xe3   :  { %v274_v56 = vmax.f32 %v235_v54, 0.0 }
  0xe5   :  { %288 = vst.msk [vmem:[%s651_s5 + $0x30] sm:$0xff] %vm281_vm3, %v274_v56 }

// kernel: espnet_encode.4
= control target key start
LH: loop header
LB: loop body
LE: loop exit
PB: predicated region body
PF: predicated region fallthrough
CT: control target
= control target key end

     0   :  { %vm145_vm0 = vcmask 785408   ;;  %vm722_vm1 = vmmov 0   ;;  %vm524_vm2 = vcmask 259072   ;;  %s1179_s1 = inlined_call_operand.vmem [shape: f32[864,96], index: 1, kind: input, shape index: {}]   ;;  %s1180_s0 = inlined_call_operand.vmem [shape: f32[6,864], index: 0, kind: input, shape index: {}]   ;;  %s1181_s3 = inlined_call_operand.vmem [shape: f32[96,32], index: 3, kind: input, shape index: {}]   ;;  %s1182_s2 = inlined_call_operand.vmem [shape: f32[1,96], index: 2, kind: input, shape index: {}]   ;;  %s1183_s4 = inlined_call_operand.vmem [shape: f32[1,32], index: 4, kind: input, shape index: {}]   ;;  %s1184_s5 = inlined_call_operand.vmem [shape: f32[6,32], index: 5, kind: input, shape index: {}]   ;;  %s1185_s6 = inlined_call_operand.vmem [shape: f32[6,32], index: 6, kind: output, shape index: {}]  }
   0x1   :  { %v61_v0 = vld [vmem:[%s1179_s1 + $0xf8] sm:$0xff]  ;;  %v60_v2 = vld [vmem:[%s1179_s1 + $0xf0] sm:$0xff]  ;;  %v59_v6 = vld [vmem:[%s1179_s1 + $0xe8] sm:$0xff] }
   0x2   :  { %v45_v1 = vld [vmem:[%s1179_s1 + $0x78] sm:$0xff]  ;;  %534 = vmatprep.subr.mxu0 %v61_v0  ;;  %v44_v4 = vld [vmem:[%s1179_s1 + $0x70] sm:$0xff]  ;;  %v43_v8 = vld [vmem:[%s1179_s1 + $0x68] sm:$0xff] }
   0x3   :  { %v93_v3 = vld [vmem:[%s1179_s1 + $0x1f8] sm:$0xff]  ;;  %535 = vmatpush3.msra.mxu0 %v45_v1  ;;  %v92_v7 = vld [vmem:[%s1179_s1 + $0x1f0] sm:$0xff]  ;;  %v91_v10 = vld [vmem:[%s1179_s1 + $0x1e8] sm:$0xff] }
   0x4   :  { %v77_v5 = vld [vmem:[%s1179_s1 + $0x178] sm:$0xff]  ;;  %569 = vmatprep.subr.mxu1 %v93_v3  ;;  %536 = vmatprep.subr.mxu0 %v60_v2  ;;  %v76_v9 = vld [vmem:[%s1179_s1 + $0x170] sm:$0xff]  ;;  %v58_v11 = vld [vmem:[%s1179_s1 + $0xe0] sm:$0xff] }
   0x5   :  { %570 = vmatpush3.msra.mxu1 %v77_v5  ;;  %537 = vmatpush3.msra.mxu0 %v44_v4  ;;  %v75_v12 = vld [vmem:[%s1179_s1 + $0x168] sm:$0xff]  ;;  %v42_v13 = vld [vmem:[%s1179_s1 + $0x60] sm:$0xff]  ;;  %v57_v15 = vld [vmem:[%s1179_s1 + $0xd8] sm:$0xff] }
   0x6   :  { %571 = vmatprep.subr.mxu1 %v92_v7  ;;  %538 = vmatprep.subr.mxu0 %v59_v6  ;;  %v90_v14 = vld [vmem:[%s1179_s1 + $0x1e0] sm:$0xff]  ;;  %v41_v17 = vld [vmem:[%s1179_s1 + $0x58] sm:$0xff]  ;;  %v56_v19 = vld [vmem:[%s1179_s1 + $0xd0] sm:$0xff] }
   0x7   :  { %572 = vmatpush3.msra.mxu1 %v76_v9  ;;  %539 = vmatpush3.msra.mxu0 %v43_v8  ;;  %v74_v16 = vld [vmem:[%s1179_s1 + $0x160] sm:$0xff]  ;;  %v89_v18 = vld [vmem:[%s1179_s1 + $0x1d8] sm:$0xff]  ;;  %v40_v21 = vld [vmem:[%s1179_s1 + $0x50] sm:$0xff] }
   0x8   :  { %573 = vmatprep.subr.mxu1 %v91_v10  ;;  %540 = vmatprep.subr.mxu0 %v58_v11  ;;  %v73_v20 = vld [vmem:[%s1179_s1 + $0x158] sm:$0xff]  ;;  %v88_v22 = vld [vmem:[%s1179_s1 + $0x1d0] sm:$0xff]  ;;  %v55_v23 = vld [vmem:[%s1179_s1 + $0xc8] sm:$0xff] }
   0x9   :  { %574 = vmatpush3.msra.mxu1 %v75_v12  ;;  %541 = vmatpush3.msra.mxu0 %v42_v13  ;;  %v72_v24 = vld [vmem:[%s1179_s1 + $0x150] sm:$0xff]  ;;  %v39_v25 = vld [vmem:[%s1179_s1 + $0x48] sm:$0xff]  ;;  %v54_v27 = vld [vmem:[%s1179_s1 + $0xc0] sm:$0xff]  ;;  %v721_v12 = vmov 0.0  }
   0xa   :  { %575 = vmatprep.subr.mxu1 %v90_v14  ;;  %542 = vmatprep.subr.mxu0 %v57_v15  ;;  %v87_v26 = vld [vmem:[%s1179_s1 + $0x1c8] sm:$0xff]  ;;  %v38_v29 = vld [vmem:[%s1179_s1 + $0x40] sm:$0xff]  ;;  %v53_v31 = vld [vmem:[%s1179_s1 + $0xb8] sm:$0xff] }
   0xb   :  { %576 = vmatpush3.msra.mxu1 %v74_v16  ;;  %543 = vmatpush3.msra.mxu0 %v41_v17  ;;  %v71_v28 = vld [vmem:[%s1179_s1 + $0x148] sm:$0xff]  ;;  %v86_v30 = vld [vmem:[%s1179_s1 + $0x1c0] sm:$0xff]  ;;  %v37_v33 = vld [vmem:[%s1179_s1 + $0x38] sm:$0xff] }
   0xc   :  { %577 = vmatprep.subr.mxu1 %v89_v18  ;;  %544 = vmatprep.subr.mxu0 %v56_v19  ;;  %v70_v32 = vld [vmem:[%s1179_s1 + $0x140] sm:$0xff]  ;;  %v85_v34 = vld [vmem:[%s1179_s1 + $0x1b8] sm:$0xff]  ;;  %v52_v35 = vld [vmem:[%s1179_s1 + $0xb0] sm:$0xff] }
   0xd   :  { %578 = vmatpush3.msra.mxu1 %v73_v20  ;;  %545 = vmatpush3.msra.mxu0 %v40_v21  ;;  %v69_v36 = vld [vmem:[%s1179_s1 + $0x138] sm:$0xff]  ;;  %v36_v37 = vld [vmem:[%s1179_s1 + $0x30] sm:$0xff]  ;;  %v51_v39 = vld [vmem:[%s1179_s1 + $0xa8] sm:$0xff] }
   0xe   :  { %579 = vmatprep.subr.mxu1 %v88_v22  ;;  %546 = vmatprep.subr.mxu0 %v55_v23  ;;  %v84_v38 = vld [vmem:[%s1179_s1 + $0x1b0] sm:$0xff]  ;;  %v35_v41 = vld [vmem:[%s1179_s1 + $0x28] sm:$0xff]  ;;  %v50_v43 = vld [vmem:[%s1179_s1 + $0xa0] sm:$0xff] }
   0xf   :  { %580 = vmatpush3.msra.mxu1 %v72_v24  ;;  %547 = vmatpush3.msra.mxu0 %v39_v25  ;;  %v68_v40 = vld [vmem:[%s1179_s1 + $0x130] sm:$0xff]  ;;  %v83_v42 = vld [vmem:[%s1179_s1 + $0x1a8] sm:$0xff]  ;;  %v34_v45 = vld [vmem:[%s1179_s1 + $0x20] sm:$0xff] }
  0x10   :  { %581 = vmatprep.subr.mxu1 %v87_v26  ;;  %548 = vmatprep.subr.mxu0 %v54_v27  ;;  %v67_v44 = vld [vmem:[%s1179_s1 + $0x128] sm:$0xff]  ;;  %v82_v46 = vld [vmem:[%s1179_s1 + $0x1a0] sm:$0xff]  ;;  %v49_v47 = vld [vmem:[%s1179_s1 + $0x98] sm:$0xff] }
  0x11   :  { %582 = vmatpush3.msra.mxu1 %v71_v28  ;;  %549 = vmatpush3.msra.mxu0 %v38_v29  ;;  %v66_v48 = vld [vmem:[%s1179_s1 + $0x120] sm:$0xff]  ;;  %v33_v49 = vld [vmem:[%s1179_s1 + $0x18] sm:$0xff]  ;;  %v48_v51 = vld [vmem:[%s1179_s1 + $0x90] sm:$0xff] }
  0x12   :  { %583 = vmatprep.subr.mxu1 %v86_v30  ;;  %550 = vmatprep.subr.mxu0 %v53_v31  ;;  %v81_v50 = vld [vmem:[%s1179_s1 + $0x198] sm:$0xff]  ;;  %v32_v53 = vld [vmem:[%s1179_s1 + $0x10] sm:$0xff]  ;;  %v47_v55 = vld [vmem:[%s1179_s1 + $0x88] sm:$0xff] }
  0x13   :  { %584 = vmatpush3.msra.mxu1 %v70_v32  ;;  %551 = vmatpush3.msra.mxu0 %v37_v33  ;;  %v65_v52 = vld [vmem:[%s1179_s1 + $0x118] sm:$0xff]  ;;  %v80_v54 = vld [vmem:[%s1179_s1 + $0x190] sm:$0xff]  ;;  %v31_v57 = vld [vmem:[%s1179_s1 + $0x8] sm:$0xff] }
  0x14   :  { %585 = vmatprep.subr.mxu1 %v85_v34  ;;  %552 = vmatprep.subr.mxu0 %v52_v35  ;;  %v64_v56 = vld [vmem:[%s1179_s1 + $0x110] sm:$0xff]  ;;  %v79_v58 = vld [vmem:[%s1179_s1 + $0x188] sm:$0xff]  ;;  %v46_v59 = vld [vmem:[%s1179_s1 + $0x80] sm:$0xff] }
  0x15   :  { %586 = vmatpush3.msra.mxu1 %v69_v36  ;;  %553 = vmatpush3.msra.mxu0 %v36_v37  ;;  %v24_v60 = vld [vmem:[%s1180_s0 + $0x8] sm:$0x3f]  ;;  %v30_v61 = vld [vmem:[%s1179_s1] sm:$0xff]  ;;  %v125_v1 = vld [vmem:[%s1179_s1 + $0x2f8] sm:$0xff] }
  0x16   :  { %587 = vmatprep.subr.mxu1 %v84_v38  ;;  %554 = vmatprep.subr.mxu0 %v51_v39  ;;  %v63_v62 = vld [vmem:[%s1179_s1 + $0x108] sm:$0xff]  ;;  %v23_v63 = vld [vmem:[%s1180_s0] sm:$0x3f]  ;;  %v26_v3 = vld [vmem:[%s1180_s0 + $0x18] sm:$0x3f] }
  0x17   :  { %588 = vmatpush3.msra.mxu1 %v68_v40  ;;  %555 = vmatpush3.msra.mxu0 %v35_v41  ;;  %v78_v0 = vld [vmem:[%s1179_s1 + $0x180] sm:$0xff]  ;;  %v109_v4 = vld [vmem:[%s1179_s1 + $0x278] sm:$0xff]  ;;  %v25_v5 = vld [vmem:[%s1180_s0 + $0x10] sm:$0x3f] }
  0x18   :  { %589 = vmatprep.subr.mxu1 %v83_v42  ;;  %556 = vmatprep.subr.mxu0 %v50_v43  ;;  %v62_v2 = vld [vmem:[%s1179_s1 + $0x100] sm:$0xff]  ;;  %v124_v6 = vld [vmem:[%s1179_s1 + $0x2f0] sm:$0xff]  ;;  %v123_v8 = vld [vmem:[%s1179_s1 + $0x2e8] sm:$0xff] }
  0x19   :  { %590 = vmatpush3.msra.mxu1 %v67_v44  ;;  %557 = vmatpush3.msra.mxu0 %v34_v45  ;;  %v108_v7 = vld [vmem:[%s1179_s1 + $0x270] sm:$0xff]  ;;  %v137_v9 = vld [vmem:[%s1179_s1 + $0x358] sm:$0xff]  ;;  %v107_v10 = vld [vmem:[%s1179_s1 + $0x268] sm:$0xff] }
  0x1a   :  { %591 = vmatprep.subr.mxu1 %v82_v46  ;;  %558 = vmatprep.subr.mxu0 %v49_v47  ;;  %v122_v11 = vld [vmem:[%s1179_s1 + $0x2e0] sm:$0xff]  ;;  %v136_v13 = vld [vmem:[%s1179_s1 + $0x350] sm:$0xff]  ;;  %v121_v15 = vld [vmem:[%s1179_s1 + $0x2d8] sm:$0xff] }
  0x1b   :  { %592 = vmatpush3.msra.mxu1 %v66_v48  ;;  %559 = vmatpush3.msra.mxu0 %v33_v49  ;;  %v106_v14 = vld [vmem:[%s1179_s1 + $0x260] sm:$0xff]  ;;  %v135_v16 = vld [vmem:[%s1179_s1 + $0x348] sm:$0xff]  ;;  %v105_v17 = vld [vmem:[%s1179_s1 + $0x258] sm:$0xff] }
  0x1c   :  { %593 = vmatprep.subr.mxu1 %v81_v50  ;;  %560 = vmatprep.subr.mxu0 %v48_v51  ;;  %v120_v18 = vld [vmem:[%s1179_s1 + $0x2d0] sm:$0xff]  ;;  %v134_v19 = vld [vmem:[%s1179_s1 + $0x340] sm:$0xff]  ;;  %v119_v21 = vld [vmem:[%s1179_s1 + $0x2c8] sm:$0xff] }
  0x1d   :  { %594 = vmatpush3.msra.mxu1 %v65_v52  ;;  %561 = vmatpush3.msra.mxu0 %v32_v53  ;;  %v104_v20 = vld [vmem:[%s1179_s1 + $0x250] sm:$0xff]  ;;  %v133_v22 = vld [vmem:[%s1179_s1 + $0x338] sm:$0xff]  ;;  %v103_v23 = vld [vmem:[%s1179_s1 + $0x248] sm:$0xff] }
  0x1e   :  { %595 = vmatprep.subr.mxu1 %v80_v54  ;;  %562 = vmatprep.subr.mxu0 %v47_v55  ;;  %v118_v24 = vld [vmem:[%s1179_s1 + $0x2c0] sm:$0xff]  ;;  %v132_v25 = vld [vmem:[%s1179_s1 + $0x330] sm:$0xff]  ;;  %v117_v27 = vld [vmem:[%s1179_s1 + $0x2b8] sm:$0xff] }
  0x1f   :  { %596 = vmatpush3.msra.mxu1 %v64_v56  ;;  %563 = vmatpush3.msra.mxu0 %v31_v57  ;;  %v102_v26 = vld [vmem:[%s1179_s1 + $0x240] sm:$0xff]  ;;  %v131_v28 = vld [vmem:[%s1179_s1 + $0x328] sm:$0xff]  ;;  %v101_v29 = vld [vmem:[%s1179_s1 + $0x238] sm:$0xff] }
  0x20   :  { %597 = vmatprep.subr.mxu1 %v79_v58  ;;  %564 = vmatprep.subr.mxu0 %v46_v59  ;;  %v116_v30 = vld [vmem:[%s1179_s1 + $0x2b0] sm:$0xff]  ;;  %v130_v31 = vld [vmem:[%s1179_s1 + $0x320] sm:$0xff]  ;;  %v115_v33 = vld [vmem:[%s1179_s1 + $0x2a8] sm:$0xff] }
  0x21   :  { %213 = vmatprep.mubr.f32.mxu0 %v24_v60  ;;  %565 = vmatpush3.msra.mxu0 %v30_v61  ;;  %v100_v32 = vld [vmem:[%s1179_s1 + $0x230] sm:$0xff]  ;;  %v129_v34 = vld [vmem:[%s1179_s1 + $0x318] sm:$0xff]  ;;  %v99_v35 = vld [vmem:[%s1179_s1 + $0x228] sm:$0xff] }
  0x22   :  { %598 = vmatpush3.msra.mxu1 %v63_v62  ;;  %214 = vmatmul.mubr.f32.vlgmr.msra.gmra.mxu0 %v23_v63  ;;  %v114_v36 = vld [vmem:[%s1179_s1 + $0x2a0] sm:$0xff]  ;;  %v28_v37 = vld [vmem:[%s1180_s0 + $0x28] sm:$0x3f]  ;;  %v128_v39 = vld [vmem:[%s1179_s1 + $0x310] sm:$0xff] }
  0x23   :  { %599 = vmatprep.subr.mxu1 %v78_v0  ;;  %604 = vmatprep.subr.mxu0 %v125_v1  ;;  %v98_v38 = vld [vmem:[%s1179_s1 + $0x220] sm:$0xff]  ;;  %v113_v40 = vld [vmem:[%s1179_s1 + $0x298] sm:$0xff]  ;;  %v127_v42 = vld [vmem:[%s1179_s1 + $0x308] sm:$0xff] }
  0x24   :  { %600 = vmatpush3.msra.mxu1 %v62_v2  ;;  %283 = vmatprep.mubr.f32.mxu1 %v26_v3  ;;  %v97_v41 = vld [vmem:[%s1179_s1 + $0x218] sm:$0xff]  ;;  %v112_v43 = vld [vmem:[%s1179_s1 + $0x290] sm:$0xff]  ;;  %v126_v45 = vld [vmem:[%s1179_s1 + $0x300] sm:$0xff] }
  0x25   :  { %605 = vmatpush3.msra.mxu0 %v109_v4  ;;  %284 = vmatmul.mubr.f32.vlgmr.msra.gmra.mxu1 %v25_v5  ;;  %v96_v44 = vld [vmem:[%s1179_s1 + $0x210] sm:$0xff]  ;;  %v111_v46 = vld [vmem:[%s1179_s1 + $0x288] sm:$0xff]  ;;  %v110_v49 = vld [vmem:[%s1179_s1 + $0x280] sm:$0xff] }
  0x26   :  { %606 = vmatprep.subr.mxu0 %v124_v6  ;;  %665 = vmatprep.subr.mxu1 %v721_v12  ;;  %v95_v47 = vld [vmem:[%s1179_s1 + $0x208] sm:$0xff]  ;;  %v29_v48 = vld [vmem:[%s1180_s0 + $0x30] sm:$0x3f]  ;;  %v94_v50 = vld [vmem:[%s1179_s1 + $0x200] sm:$0xff] }
  0x27   :  { %607 = vmatpush3.msra.mxu0 %v108_v7  ;;  %666 = vmatpush3.msra.mxu1 %v137_v9  ;;  %v27_v51 = vld [vmem:[%s1180_s0 + $0x20] sm:$0x3f]  ;;  %v441_v52 = vld [vmem:[%s1181_s3 + $0x58] sm:$0xff]  ;;  %v440_v53 = vld [vmem:[%s1181_s3 + $0x50] sm:$0xff] }
  0x28   :  { %608 = vmatprep.subr.mxu0 %v123_v8  ;;  %667 = vmatprep.subr.mxu1 %v721_v12  ;;  %v439_v54 = vld [vmem:[%s1181_s3 + $0x48] sm:$0xff]  ;;  %v438_v55 = vld [vmem:[%s1181_s3 + $0x40] sm:$0xff]  ;;  %v437_v56 = vld [vmem:[%s1181_s3 + $0x38] sm:$0xff] }
  0x29   :  { %609 = vmatpush3.msra.mxu0 %v107_v10  ;;  %668 = vmatpush3.msra.mxu1 %v136_v13  ;;  %v436_v57 = vld [vmem:[%s1181_s3 + $0x30] sm:$0xff]  ;;  %v435_v58 = vld [vmem:[%s1181_s3 + $0x28] sm:$0xff]  ;;  %v434_v59 = vld [vmem:[%s1181_s3 + $0x20] sm:$0xff] }
  0x2a   :  { %610 = vmatprep.subr.mxu0 %v122_v11  ;;  %669 = vmatprep.subr.mxu1 %v721_v12  ;;  %v433_v60 = vld [vmem:[%s1181_s3 + $0x18] sm:$0xff]  ;;  %v432_v61 = vld [vmem:[%s1181_s3 + $0x10] sm:$0xff]  ;;  %v431_v62 = vld [vmem:[%s1181_s3 + $0x8] sm:$0xff] }
  0x2b   :  { %611 = vmatpush3.msra.mxu0 %v106_v14  ;;  %670 = vmatpush3.msra.mxu1 %v135_v16  ;;  %v430_v63 = vld [vmem:[%s1181_s3] sm:$0xff] }
  0x2c   :  { %612 = vmatprep.subr.mxu0 %v121_v15  ;;  %671 = vmatprep.subr.mxu1 %v721_v12  ;;  %v530_v5 = vld [vmem:[%s1182_s2] ss:$0 sm:$0xff] }
  0x2d   :  { %613 = vmatpush3.msra.mxu0 %v105_v17  ;;  %672 = vmatpush3.msra.mxu1 %v134_v19  ;;  %v532_v17 = vld [vmem:[%s1183_s4] ss:$0 sm:$0xff] }
  0x2e   :  { %614 = vmatprep.subr.mxu0 %v120_v18  ;;  %673 = vmatprep.subr.mxu1 %v721_v12  ;;  %v522_v19 = vld [vmem:[%s1184_s5] sm:$0x3f] }
  0x2f   :  { %615 = vmatpush3.msra.mxu0 %v104_v20  ;;  %674 = vmatpush3.msra.mxu1 %v133_v22 }
  0x30   :  { %616 = vmatprep.subr.mxu0 %v119_v21  ;;  %675 = vmatprep.subr.mxu1 %v721_v12 }
  0x31   :  { %617 = vmatpush3.msra.mxu0 %v103_v23  ;;  %676 = vmatpush3.msra.mxu1 %v132_v25 }
  0x32   :  { %618 = vmatprep.subr.mxu0 %v118_v24  ;;  %677 = vmatprep.subr.mxu1 %v721_v12 }
  0x33   :  { %619 = vmatpush3.msra.mxu0 %v102_v26  ;;  %678 = vmatpush3.msra.mxu1 %v131_v28 }
  0x34   :  { %620 = vmatprep.subr.mxu0 %v117_v27  ;;  %679 = vmatprep.subr.mxu1 %v721_v12 }
  0x35   :  { %621 = vmatpush3.msra.mxu0 %v101_v29  ;;  %680 = vmatpush3.msra.mxu1 %v130_v31 }
  0x36   :  { %622 = vmatprep.subr.mxu0 %v116_v30  ;;  %681 = vmatprep.subr.mxu1 %v721_v12 }
  0x37   :  { %623 = vmatpush3.msra.mxu0 %v100_v32  ;;  %682 = vmatpush3.msra.mxu1 %v129_v34 }
  0x38   :  { %624 = vmatprep.subr.mxu0 %v115_v33  ;;  %683 = vmatprep.subr.mxu1 %v721_v12 }
  0x39   :  { %625 = vmatpush3.msra.mxu0 %v99_v35  ;;  %353 = vmatprep.mubr.f32.mxu0 %v28_v37 }
  0x3a   :  { %626 = vmatprep.subr.mxu0 %v114_v36  ;;  %684 = vmatpush3.msra.mxu1 %v128_v39 }
  0x3b   :  { %627 = vmatpush3.msra.mxu0 %v98_v38  ;;  %685 = vmatprep.subr.mxu1 %v721_v12 }
  0x3c   :  { %628 = vmatprep.subr.mxu0 %v113_v40  ;;  %686 = vmatpush3.msra.mxu1 %v127_v42 }
  0x3d   :  { %629 = vmatpush3.msra.mxu0 %v97_v41  ;;  %687 = vmatprep.subr.mxu1 %v721_v12 }
  0x3e   :  { %630 = vmatprep.subr.mxu0 %v112_v43  ;;  %688 = vmatpush3.msra.mxu1 %v126_v45 }
  0x3f   :  { %631 = vmatpush3.msra.mxu0 %v96_v44  ;;  %689 = vmatprep.mubr.msk.f32.mxu1 %vm722_vm1, %v721_v12 }
  0x40   :  { %632 = vmatprep.subr.mxu0 %v111_v46  ;;  %690 = vmatmul.mubr.msk.f32.vlgmr.msra.gmra.mxu1 %vm145_vm0, %v29_v48 }
  0x41   :  { %633 = vmatpush3.msra.mxu0 %v95_v47  ;;  %692 = vmatprep.subr.mxu1 %v721_v12 }
  0x42   :  { %634 = vmatprep.subr.mxu0 %v110_v49  ;;  %716 = vmatprep.mubr.msk.f32.mxu1 %vm722_vm1, %v721_v12 }
  0x43   :  { %635 = vmatpush3.msra.mxu0 %v94_v50  ;;  %693 = vmatpush3.msra.mxu1 %v441_v52 }
  0x44   :  { %354 = vmatmul.mubr.f32.vlgmr.msra.gmra.mxu0 %v27_v51  ;;  %694 = vmatprep.subr.mxu1 %v721_v12 }
  0x45   :  { %695 = vmatpush3.msra.mxu1 %v440_v53 }
  0x46   :  { %696 = vmatprep.subr.mxu1 %v721_v12 }
  0x47   :  { %697 = vmatpush3.msra.mxu1 %v439_v54 }
  0x48   :  { %698 = vmatprep.subr.mxu1 %v721_v12 }
  0x49   :  { %699 = vmatpush3.msra.mxu1 %v438_v55 }
  0x4a   :  { %700 = vmatprep.subr.mxu1 %v721_v12 }
  0x4b   :  { %701 = vmatpush3.msra.mxu1 %v437_v56 }
  0x4c   :  { %702 = vmatprep.subr.mxu1 %v721_v12 }
  0x4d   :  { %703 = vmatpush3.msra.mxu1 %v436_v57 }
  0x4e   :  { %704 = vmatprep.subr.mxu1 %v721_v12 }
  0x4f   :  { %705 = vmatpush3.msra.mxu1 %v435_v58 }
  0x50   :  { %706 = vmatprep.subr.mxu1 %v721_v12 }
  0x51   :  { %707 = vmatpush3.msra.mxu1 %v434_v59 }
  0x52   :  { %708 = vmatprep.subr.mxu1 %v721_v12 }
  0x53   :  { %709 = vmatpush3.msra.mxu1 %v433_v60 }
  0x54   :  { %710 = vmatprep.subr.mxu1 %v721_v12 }
  0x55   :  { %711 = vmatpush3.msra.mxu1 %v432_v61 }
  0x56   :  { %712 = vmatprep.subr.mxu1 %v721_v12 }
  0x57   :  { %713 = vmatpush3.msra.mxu1 %v431_v62 }
  0x58   :  { %714 = vmatprep.subr.mxu1 %v721_v12 }
  0x59   :  { %715 = vmatpush3.msra.mxu1 %v430_v63 }
  0xe2   :  { %v566_v0 = vpop.f32.mrf.mxu0 }
  0xe4   :  { %v567_v2 = vpop.f32.mrf.mxu0 }
  0xe5   :  { %v601_v1 = vpop.f32.mrf.mxu1  ;;  %v568_v3 = vadd.f32 %v567_v2, %v566_v0 }
  0xe7   :  { %v602_v4 = vpop.f32.mrf.mxu1  ;;  %v216_v7 = vadd.f32 %v568_v3, %v530_v5 }
  0xe8   :  { %v603_v8 = vadd.f32 %v602_v4, %v601_v1 }
  0xea   :  { %v286_v12 = vadd.f32 %v603_v8, %v216_v7 }
 0x100   :  { %v425_v6 = vpop.f32.mrf.mxu1 }
 0x102   :  { %v691_v9 = vpop.f32.mrf.mxu1 }
 0x104   :  { %v636_v10 = vpop.f32.mrf.mxu0 }
 0x106   :  { %v637_v11 = vpop.f32.mrf.mxu0 }
 0x107   :  { %v638_v13 = vadd.f32 %v637_v11, %v636_v10 }
 0x109   :  { %v356_v14 = vadd.f32 %v638_v13, %v286_v12 }
 0x10b   :  { %v426_v15 = vadd.f32 %v425_v6, %v356_v14 }
 0x10d   :  { %v429_v16 = vmax.f32 %v426_v15, 0.0 }
 0x10f   :  { %717 = vmatmul.mubr.msk.f32.vlgmr.msra.gmra.mxu1 %vm145_vm0, %v429_v16 }
 0x1cf   :  { %v518_v18 = vpop.f32.mrf.mxu1 }
 0x1d0   :  { %v519_v20 = vadd.f32 %v532_v17, %v518_v18 }
 0x1d1   :  { %v718_v21 = vpop.f32.mrf.mxu1 }
 0x1d2   :  { %v523_v22 = vadd.f32 %v522_v19, %v519_v20 }
 0x1d4   :  { %525 = vst.msk [vmem:[%s1185_s6] sm:$0x3f] %vm524_vm2, %v523_v22 }

// kernel: espnet_encode.5
= control target key start
LH: loop header
LB: loop body
LE: loop exit
PB: predicated region body
PF: predicated region fallthrough
CT: control target
= control target key end

     0   :  { %vm57_vm0 = vcmask 259072   ;;  %v3118_v7 = vmov 0.0   ;;  %vm3119_vm1 = vmmov 0   ;;  %vm97_vm2 = vcmask 261120   ;;  %s3121_s24 = smov 96   ;;  %s3122_s25 = smov 88   ;;  %s3663_s0 = inlined_call_operand.vmem [shape: f32[6,32], index: 0, kind: input, shape index: {}]   ;;  %s3664_s2 = inlined_call_operand.vmem [shape: f32[2,32,96], index: 2, kind: input, shape index: {}]   ;;  %s3665_s6 = inlined_call_operand.vmem [shape: f32[2,1,32], index: 6, kind: input, shape index: {}]   ;;  %s3666_s7 = inlined_call_operand.vmem [shape: f32[2,1,32], index: 7, kind: input, shape index: {}]   ;;  %s3667_s3 = inlined_call_operand.vmem [shape: f32[2,1,96], index: 3, kind: input, shape index: {}]   ;;  %s3668_s1 = inlined_call_operand.vmem [shape: f32[6,6], index: 1, kind: input, shape index: {}]   ;;  %s3669_s4 = inlined_call_operand.vmem [shape: f32[2,32,32], index: 4, kind: input, shape index: {}]   ;;  %s3670_s5 = inlined_call_operand.vmem [shape: f32[2,1,32], index: 5, kind: input, shape index: {}]   ;;  %s3671_s10 = inlined_call_operand.vmem [shape: f32[2,32,64], index: 10, kind: input, shape index: {}]   ;;  %s3672_s12 = inlined_call_operand.vmem [shape: f32[2,64,32], index: 12, kind: input, shape index: {}]   ;;  %s3673_s8 = inlined_call_operand.vmem [shape: f32[2,1,32], index: 8, kind: input, shape index: {}]   ;;  %s3674_s9 = inlined_call_operand.vmem [shape: f32[2,1,32], index: 9, kind: input, shape index: {}]   ;;  %s3675_s11 = inlined_call_operand.vmem [shape: f32[2,1,64], index: 11, kind: input, shape index: {}]   ;;  %s3676_s13 = inlined_call_operand.vmem [shape: f32[2,1,32], index: 13, kind: input, shape index: {}]   ;;  %s3677_s14 = inlined_call_operand.vmem [shape: f32[1,32], index: 14, kind: input, shape index: {}]   ;;  %s3678_s15 = inlined_call_operand.vmem [shape: f32[1,32], index: 15, kind: input, shape index: {}]   ;;  %s3679_s16 = inlined_call_operand.vmem [shape: f32[6,32], index: 16, kind: output, shape index: {}]  }
   0x1   :  { %3683 = sst [smem:[#allocation2_spill]] %s3663_s0  ;;  %2861 = vmatprep.subr.mxu0 %v3118_v7  ;;  %v89_v8 = vld [vmem:[%s3664_s2 + $0x18] sm:$0xff]  ;;  %v88_v9 = vld [vmem:[%s3664_s2 + $0x10] sm:$0xff]  ;;  %2869 = vmatprep.mubr.msk.f32.mxu0 %vm3119_vm1, %v3118_v7  ;;  %v87_v10 = vld [vmem:[%s3664_s2 + $0x8] sm:$0xff]  ;;  %vm178_vm3 = vcmask 64512   ;;  %vm253_vm4 = vcmask 46080  }
   0x2   :  { %s3684_s23 = sld [smem:[#allocation2_spill]]  ;;  %2862 = vmatpush3.msra.mxu0 %v89_v8  ;;  %2877 = vmatprep.subr.mxu1 %v3118_v7  ;;  %v86_v11 = vld [vmem:[%s3664_s2] sm:$0xff]  ;;  %s3123_s28 = smov 56   ;;  %vm271_vm5 = vcmask 1045504   ;;  %vm267_vm6 = vcmask 48128   ;;  %v172_v56 = vld [vmem:[%s3669_s4 + $0x8] sm:$0xff] }
   0x3   :  { %2863 = vmatprep.subr.mxu0 %v3118_v7  ;;  %2879 = vmatprep.mubr.msk.f32.mxu1 %vm3119_vm1, %v3118_v7  ;;  %v2683_v16 = vld [vmem:[%s3665_s6] ss:$0 sm:$0xff]  ;;  %s3125_s29 = smov 80   ;;  %s3126_s30 = smov 112   ;;  %vm1267_vm7 = vcmask 523264  }
   0x4   :  { %2864 = vmatpush3.msra.mxu0 %v88_v9  ;;  %v2684_v18 = vld [vmem:[%s3666_s7] ss:$0 sm:$0xff]  ;;  %s3681_s20 = smov 48   ;;  %s3682_s21 = smov 104  }
   0x5   :  { %2865 = vmatprep.subr.mxu0 %v3118_v7  ;;  %v2685_v21 = vld [vmem:[%s3667_s3] ss:$0 sm:$0xff]  ;;  %s3129_s22 = smov 72   ;;  %s3680_s0 = smov 40  }
   0x6   :  { %2866 = vmatpush3.msra.mxu0 %v87_v10  ;;  %v3281_v28 = vld [vmem:[%s3668_s1] sm:$0x3f]  ;;  %s3124_s1 = smov 64  }
   0x7   :  { %2867 = vmatprep.subr.mxu0 %v3118_v7  ;;  %v171_v55 = vld [vmem:[%s3669_s4] sm:$0xff] }
   0x8   :  { %v3219_v0 = vld [vmem:[%s3684_s23] sm:$0x3f]  ;;  %2868 = vmatpush3.msra.mxu0 %v86_v11  ;;  %s3120_s23 = smov 120  }
   0x9   :  { %v58_v1 = vsel %vm57_vm0, %v3219_v0, 0.0  ;;  %2872 = vmatprep.subr.mxu0 %v3118_v7 }
   0xa   :  { %59 = vadd.xlane.f32.xlu0 %v58_v1 }
  0x93   :  { %v60_v2 = vpop.xlane.xlu0 %59 }
  0x94   :  { %v62_v3 = vmul.f32 0.03125, %v60_v2 }
  0x96   :  { %v63_v4 = vsub.f32 %v3219_v0, %v62_v3 }
  0x98   :  { %v64_v5 = vmul.f32 %v63_v4, %v63_v4 }
  0x9a   :  { %v65_v6 = vsel %vm57_vm0, %v64_v5, 0.0 }
  0x9b   :  { %66 = vadd.xlane.f32.xlu0 %v65_v6 }
 0x124   :  { %v67_v12 = vpop.xlane.xlu0 %66 }
 0x125   :  { %v68_v13 = vmul.f32 0.03125, %v67_v12 }
 0x127   :  { %v69_v14 = vadd.f32 1e-12, %v68_v13 }
 0x129   :  { %3076 = vrsqrt.f32 %v69_v14 }
 0x136   :  { %v3077_v15 = vpop.eup %3076 }
 0x137   :  { %v71_v17 = vmul.f32 %v3077_v15, %v63_v4 }
 0x139   :  { %v78_v19 = vmul.f32 %v2683_v16, %v71_v17 }
 0x13b   :  { %v85_v20 = vadd.f32 %v2684_v18, %v78_v19 }
 0x13d   :  { %2870 = vmatmul.mubr.msk.f32.vlgmr.msra.gmra.mxu0 %vm97_vm2, %v85_v20 }
 0x13e   :  { %2874 = vmatprep.mubr.msk.f32.mxu0 %vm3119_vm1, %v3118_v7 }
 0x1fd   :  { %v167_v22 = vpop.f32.mrf.mxu0 }
 0x1fe   :  { %v3259_v23 = vadd.f32 %v2685_v21, %v167_v22  ;;  %v173_v21 = vld [vmem:[%s3669_s4 + $0x10] sm:$0xff] }
 0x1ff   :  { %v2871_v24 = vpop.f32.mrf.mxu0 }
 0x200   :  { %344 = vrot.lane.b32.xlu0 %v3259_v23, %s3120_s23  ;;  %176 = vrot.lane.b32.xlu1 %v3259_v23, %s3121_s24 }
 0x204   :  { %346 = vrot.lane.b32.xlu1 %v3259_v23, %s3122_s25 }
 0x272   :  { %v177_v25 = vpop.permute.xlu1 %176  ;;  %v345_v27 = vpop.permute.xlu0 %344 }
 0x273   :  { %2873 = vmatpush3.xpose.msk.msra.mxu0 %vm178_vm3, %v177_v25 }
 0x274   :  { %2882 = vmatprep.subr.mxu0 %v3118_v7 }
 0x276   :  { %2875 = vmatmul.mubr.msk.f32.vlgmr.msra.gmra.mxu0 %vm178_vm3, %v3259_v23  ;;  %v347_v26 = vpop.permute.xlu1 %346 }
 0x277   :  { %2883 = vmatpush3.xpose.msk.msra.mxu0 %vm178_vm3, %v347_v26  ;;  %2884 = vmatprep.mubr.msk.f32.mxu0 %vm3119_vm1, %v3118_v7 }
 0x278   :  { %2892 = vmatprep.subr.mxu0 %v3118_v7 }
 0x27a   :  { %2885 = vmatmul.mubr.msk.f32.vlgmr.msra.gmra.mxu0 %vm178_vm3, %v345_v27 }
 0x27b   :  { %2894 = vmatprep.mubr.msk.f32.mxu0 %vm3119_vm1, %v3118_v7  ;;  %2893 = vmatpush3.msra.mxu0 %v172_v56  ;;  %v1177_v56 = vld [vmem:[%s3671_s10 + $0x18] sm:$0xff] }
 0x27c   :  { %2902 = vmatprep.subr.mxu0 %v3118_v7 }
 0x336   :  { %v249_v29 = vpop.f32.mrf.mxu0 }
 0x337   :  { %v250_v30 = vadd.f32 %v249_v29, %v3281_v28 }
 0x338   :  { %v2876_v31 = vpop.f32.mrf.mxu0 }
 0x339   :  { %v254_v32 = vsel %vm253_vm4, %v250_v30, -inf }
 0x33a   :  { %255 = vmax.xlane.f32.xlu1 %v254_v32  ;;  %v418_v33 = vpop.f32.mrf.mxu0 }
 0x33b   :  { %v419_v34 = vadd.f32 %v418_v33, %v3281_v28 }
 0x33c   :  { %v2886_v35 = vpop.f32.mrf.mxu0 }
 0x33d   :  { %v422_v36 = vsel %vm253_vm4, %v419_v34, -inf  ;;  %v174_v35 = vld [vmem:[%s3669_s4 + $0x18] sm:$0xff] }
 0x33e   :  { %423 = vmax.xlane.f32.xlu0 %v422_v36 }
 0x354   :  { %433 = vrot.lane.b32.xlu0 %v3259_v23, %s3123_s28 }
 0x3c3   :  { %v256_v37 = vpop.xlane.xlu1 %255 }
 0x3c4   :  { %v257_v38 = vsub.f32 %v250_v30, %v256_v37 }
 0x3c6   :  { %v258_v39 = vmul.f32 1.442695, %v257_v38 }
 0x3c7   :  { %v424_v40 = vpop.xlane.xlu0 %423 }
 0x3c8   :  { %3078 = vpow2.f32 %v258_v39  ;;  %v425_v41 = vsub.f32 %v419_v34, %v424_v40 }
 0x3ca   :  { %v426_v42 = vmul.f32 1.442695, %v425_v41 }
 0x3cb   :  { %v434_v52 = vpop.permute.xlu0 %433 }
 0x3cc   :  { %3080 = vpow2.f32 %v426_v42 }
 0x3d5   :  { %v3079_v43 = vpop.eup %3078 }
 0x3d6   :  { %v260_v44 = vsel %vm253_vm4, %v3079_v43, 0.0 }
 0x3d7   :  { %261 = vadd.xlane.f32.xlu1 %v260_v44 }
 0x3d9   :  { %v3081_v45 = vpop.eup %3080 }
 0x3da   :  { %v428_v46 = vsel %vm253_vm4, %v3081_v45, 0.0 }
 0x3db   :  { %429 = vadd.xlane.f32.xlu1 %v428_v46  ;;  %v2707_v46 = vld [vmem:[%s3670_s5] ss:$0 sm:$0xff] }
 0x3ec   :  { %265 = vrot.lane.b32.xlu1 %v3259_v23, %s3124_s1 }
 0x3f0   :  { %658 = vrot.lane.b32.xlu1 %v3259_v23, %s3125_s29 }
 0x3f4   :  { %656 = vrot.lane.b32.xlu1 %v3259_v23, %s3126_s30 }
 0x460   :  { %v262_v47 = vpop.xlane.xlu1 %261 }
 0x461   :  { %3082 = vrcp.f32 %v262_v47 }
 0x464   :  { %v430_v48 = vpop.xlane.xlu1 %429 }
 0x465   :  { %3084 = vrcp.f32 %v430_v48 }
 0x468   :  { %v266_v49 = vpop.permute.xlu1 %265 }
 0x469   :  { %2878 = vmatpush3.msk.msra.mxu1 %vm271_vm5, %v266_v49 }
 0x46a   :  { %2887 = vmatprep.subr.mxu1 %v3118_v7 }
 0x46c   :  { %v659_v58 = vpop.permute.xlu1 %658 }
 0x46e   :  { %v3083_v50 = vpop.eup %3082 }
 0x46f   :  { %v264_v51 = vmul.f32 %v3083_v50, %v3079_v43 }
 0x470   :  { %v657_v62 = vpop.permute.xlu1 %656 }
 0x471   :  { %2880 = vmatmul.mubr.msk.f32.vlgmr.msra.gmra.mxu1 %vm267_vm6, %v264_v51 }
 0x472   :  { %v3085_v53 = vpop.eup %3084  ;;  %2888 = vmatpush3.msk.msra.mxu1 %vm271_vm5, %v434_v52  ;;  %2889 = vmatprep.mubr.msk.f32.mxu1 %vm3119_vm1, %v3118_v7 }
 0x473   :  { %v432_v54 = vmul.f32 %v3085_v53, %v3081_v45  ;;  %2897 = vmatprep.subr.mxu1 %v3118_v7 }
 0x475   :  { %2890 = vmatmul.mubr.msk.f32.vlgmr.msra.gmra.mxu1 %vm267_vm6, %v432_v54 }
 0x476   :  { %2899 = vmatprep.mubr.msk.f32.mxu1 %vm3119_vm1, %v3118_v7  ;;  %2898 = vmatpush3.msra.mxu1 %v171_v55 }
 0x477   :  { %2907 = vmatprep.subr.mxu1 %v3118_v7 }
 0x531   :  { %v340_v57 = vpop.f32.mrf.mxu1 }
 0x532   :  { %2900 = vmatmul.mubr.msk.f32.vlgmr.msra.gmra.mxu1 %vm178_vm3, %v340_v57  ;;  %v1175_v57 = vld [vmem:[%s3671_s10 + $0x8] sm:$0xff] }
 0x533   :  { %v2881_v59 = vpop.f32.mrf.mxu1  ;;  %2909 = vmatprep.mubr.msk.f32.mxu1 %vm3119_vm1, %v3118_v7 }
 0x534   :  { %v1266_v59 = vld [vmem:[%s3672_s12 + $0x38] sm:$0xff] }
 0x535   :  { %v506_v60 = vpop.f32.mrf.mxu1 }
 0x536   :  { %2895 = vmatmul.mubr.msk.f32.vlgmr.msra.gmra.mxu0 %vm178_vm3, %v506_v60  ;;  %v1265_v60 = vld [vmem:[%s3672_s12 + $0x30] sm:$0xff] }
 0x537   :  { %2903 = vmatpush3.xpose.msk.msra.mxu0 %vm178_vm3, %v659_v58  ;;  %v2891_v61 = vpop.f32.mrf.mxu1  ;;  %2904 = vmatprep.mubr.msk.f32.mxu0 %vm3119_vm1, %v3118_v7  ;;  %v1174_v58 = vld [vmem:[%s3671_s10] sm:$0xff] }
 0x538   :  { %2912 = vmatprep.subr.mxu0 %v3118_v7  ;;  %v1264_v61 = vld [vmem:[%s3672_s12 + $0x28] sm:$0xff] }
 0x53a   :  { %2905 = vmatmul.mubr.msk.f32.vlgmr.msra.gmra.mxu0 %vm178_vm3, %v657_v62  ;;  %v1263_v62 = vld [vmem:[%s3672_s12 + $0x20] sm:$0xff] }
 0x53b   :  { %2914 = vmatprep.mubr.msk.f32.mxu0 %vm3119_vm1, %v3118_v7  ;;  %2913 = vmatpush3.msra.mxu0 %v173_v21 }
 0x53c   :  { %2922 = vmatprep.subr.mxu0 %v3118_v7 }
 0x5f2   :  { %v652_v63 = vpop.f32.mrf.mxu1 }
 0x5f4   :  { %v2901_v1 = vpop.f32.mrf.mxu1 }
 0x5f6   :  { %v579_v2 = vpop.f32.mrf.mxu0 }
 0x5f7   :  { %v653_v3 = vadd.f32 %v652_v63, %v579_v2  ;;  %v1262_v63 = vld [vmem:[%s3672_s12 + $0x18] sm:$0xff] }
 0x5f8   :  { %v2896_v4 = vpop.f32.mrf.mxu0 }
 0x5fa   :  { %v730_v5 = vpop.f32.mrf.mxu0 }
 0x5fb   :  { %v731_v6 = vadd.f32 %v730_v5, %v3281_v28  ;;  %v2708_v5 = vld [vmem:[%s3673_s8] ss:$0 sm:$0xff] }
 0x5fc   :  { %v2906_v8 = vpop.f32.mrf.mxu0 }
 0x5fd   :  { %v734_v9 = vsel %vm253_vm4, %v731_v6, -inf  ;;  %v2709_v8 = vld [vmem:[%s3674_s9] ss:$0 sm:$0xff] }
 0x5fe   :  { %735 = vmax.xlane.f32.xlu1 %v734_v9 }
 0x60f   :  { %745 = vrot.lane.b32.xlu1 %v3259_v23, %s3681_s20 }
 0x613   :  { %896 = vrot.lane.b32.xlu1 %v3259_v23, %s3682_s21 }
 0x687   :  { %v736_v10 = vpop.xlane.xlu1 %735 }
 0x688   :  { %v737_v11 = vsub.f32 %v731_v6, %v736_v10 }
 0x68a   :  { %v738_v12 = vmul.f32 1.442695, %v737_v11  ;;  %v1261_v11 = vld [vmem:[%s3672_s12 + $0x10] sm:$0xff] }
 0x68b   :  { %v746_v13 = vpop.permute.xlu1 %745 }
 0x68c   :  { %3086 = vpow2.f32 %v738_v12  ;;  %2908 = vmatpush3.msk.msra.mxu1 %vm271_vm5, %v746_v13  ;;  %v1260_v12 = vld [vmem:[%s3672_s12 + $0x8] sm:$0xff]  ;;  %v1259_v13 = vld [vmem:[%s3672_s12] sm:$0xff] }
 0x68d   :  { %2917 = vmatprep.subr.mxu1 %v3118_v7 }
 0x68f   :  { %v897_v20 = vpop.permute.xlu1 %896 }
 0x699   :  { %v3087_v14 = vpop.eup %3086 }
 0x69a   :  { %v740_v15 = vsel %vm253_vm4, %v3087_v14, 0.0 }
 0x69b   :  { %741 = vadd.xlane.f32.xlu0 %v740_v15 }
 0x6b1   :  { %898 = vrot.lane.b32.xlu0 %v3259_v23, %s3129_s22 }
 0x724   :  { %v742_v16 = vpop.xlane.xlu0 %741 }
 0x725   :  { %3088 = vrcp.f32 %v742_v16 }
 0x728   :  { %v899_v19 = vpop.permute.xlu0 %898 }
 0x732   :  { %v3089_v17 = vpop.eup %3088 }
 0x733   :  { %v744_v18 = vmul.f32 %v3089_v17, %v3087_v14  ;;  %v2710_v14 = vld [vmem:[%s3675_s11] ss:$0 sm:$0xff] }
 0x735   :  { %2910 = vmatmul.mubr.msk.f32.vlgmr.msra.gmra.mxu1 %vm267_vm6, %v744_v18 }
 0x736   :  { %2918 = vmatpush3.xpose.msk.msra.mxu1 %vm178_vm3, %v899_v19  ;;  %2919 = vmatprep.mubr.msk.f32.mxu1 %vm3119_vm1, %v3118_v7 }
 0x737   :  { %2927 = vmatprep.subr.mxu1 %v3118_v7 }
 0x739   :  { %2920 = vmatmul.mubr.msk.f32.vlgmr.msra.gmra.mxu1 %vm178_vm3, %v897_v20  ;;  %v2713_v20 = vld [vmem:[%s3676_s13] ss:$0 sm:$0xff] }
 0x73a   :  { %2929 = vmatprep.mubr.msk.f32.mxu1 %vm3119_vm1, %v3118_v7  ;;  %2928 = vmatpush3.msra.mxu1 %v174_v35  ;;  %v2718_v35 = vld [vmem:[%s3664_s2 + $0x20] sm:$0xff] }
 0x73b   :  { %2943 = vmatprep.subr.mxu1 %v3118_v7 }
 0x7f5   :  { %v818_v22 = vpop.f32.mrf.mxu1 }
 0x7f6   :  { %2915 = vmatmul.mubr.msk.f32.vlgmr.msra.gmra.mxu0 %vm178_vm3, %v818_v22 }
 0x7f7   :  { %v2911_v24 = vpop.f32.mrf.mxu1  ;;  %2924 = vmatprep.mubr.msk.f32.mxu0 %vm3119_vm1, %v3118_v7 }
 0x7f9   :  { %v970_v25 = vpop.f32.mrf.mxu1 }
 0x7fa   :  { %v971_v26 = vadd.f32 %v970_v25, %v3281_v28 }
 0x7fb   :  { %v2921_v27 = vpop.f32.mrf.mxu1 }
 0x7fc   :  { %v974_v29 = vsel %vm253_vm4, %v971_v26, -inf }
 0x7fd   :  { %975 = vmax.xlane.f32.xlu1 %v974_v29 }
 0x886   :  { %v976_v30 = vpop.xlane.xlu1 %975 }
 0x887   :  { %v977_v31 = vsub.f32 %v971_v26, %v976_v30 }
 0x889   :  { %v978_v32 = vmul.f32 1.442695, %v977_v31 }
 0x88b   :  { %3090 = vpow2.f32 %v978_v32  ;;  %v2721_v32 = vld [vmem:[%s3664_s2 + $0x38] sm:$0xff] }
 0x898   :  { %v3091_v33 = vpop.eup %3090 }
 0x899   :  { %v980_v34 = vsel %vm253_vm4, %v3091_v33, 0.0 }
 0x89a   :  { %981 = vadd.xlane.f32.xlu0 %v980_v34  ;;  %v2719_v34 = vld [vmem:[%s3664_s2 + $0x28] sm:$0xff] }
 0x8b0   :  { %985 = vrot.lane.b32.xlu0 %v3259_v23, %s3680_s0 }
 0x8b6   :  { %v891_v36 = vpop.f32.mrf.mxu0 }
 0x8b7   :  { %v895_v37 = vadd.f32 %v891_v36, %v653_v3 }
 0x8b8   :  { %v2916_v38 = vpop.f32.mrf.mxu0 }
 0x923   :  { %v982_v39 = vpop.xlane.xlu0 %981 }
 0x924   :  { %3092 = vrcp.f32 %v982_v39 }
 0x927   :  { %v986_v40 = vpop.permute.xlu0 %985 }
 0x928   :  { %2923 = vmatpush3.msk.msra.mxu0 %vm271_vm5, %v986_v40  ;;  %v2716_v40 = vld [vmem:[%s3665_s6 + $0x1] ss:$0 sm:$0xff] }
 0x929   :  { %2932 = vmatprep.subr.mxu0 %v3118_v7 }
 0x931   :  { %v3093_v41 = vpop.eup %3092 }
 0x932   :  { %v984_v42 = vmul.f32 %v3093_v41, %v3091_v33  ;;  %v2720_v33 = vld [vmem:[%s3664_s2 + $0x30] sm:$0xff] }
 0x934   :  { %2925 = vmatmul.mubr.msk.f32.vlgmr.msra.gmra.mxu0 %vm267_vm6, %v984_v42  ;;  %v2717_v42 = vld [vmem:[%s3666_s7 + $0x1] ss:$0 sm:$0xff] }
 0x935   :  { %2940 = vmatprep.mubr.msk.f32.mxu0 %vm3119_vm1, %v3118_v7  ;;  %2933 = vmatpush3.msra.mxu0 %v1177_v56 }
 0x936   :  { %2934 = vmatprep.subr.mxu0 %v3118_v7 }
 0x9f4   :  { %v1058_v23 = vpop.f32.mrf.mxu0 }
 0x9f5   :  { %2930 = vmatmul.mubr.msk.f32.vlgmr.msra.gmra.mxu1 %vm178_vm3, %v1058_v23 }
 0x9f6   :  { %v2926_v43 = vpop.f32.mrf.mxu0  ;;  %2959 = vmatprep.mubr.msk.f32.mxu1 %vm3119_vm1, %v3118_v7  ;;  %2944 = vmatpush3.msra.mxu1 %v1266_v59 }
 0x9f7   :  { %2945 = vmatprep.subr.mxu1 %v3118_v7 }
 0x9f8   :  { %2946 = vmatpush3.msra.mxu1 %v1265_v60 }
 0x9f9   :  { %2947 = vmatprep.subr.mxu1 %v3118_v7 }
 0x9fa   :  { %2948 = vmatpush3.msra.mxu1 %v1264_v61 }
 0x9fb   :  { %2949 = vmatprep.subr.mxu1 %v3118_v7 }
 0x9fc   :  { %2950 = vmatpush3.msra.mxu1 %v1263_v62 }
 0x9fd   :  { %2951 = vmatprep.subr.mxu1 %v3118_v7 }
 0x9fe   :  { %2952 = vmatpush3.msra.mxu1 %v1262_v63 }
 0x9ff   :  { %2953 = vmatprep.subr.mxu1 %v3118_v7 }
 0xa00   :  { %2954 = vmatpush3.msra.mxu1 %v1261_v11 }
 0xa01   :  { %2955 = vmatprep.subr.mxu1 %v3118_v7 }
 0xa02   :  { %2956 = vmatpush3.msra.mxu1 %v1260_v12 }
 0xa03   :  { %2957 = vmatprep.subr.mxu1 %v3118_v7 }
 0xa04   :  { %2958 = vmatpush3.msra.mxu1 %v1259_v13 }
 0xa05   :  { %2978 = vmatprep.subr.mxu1 %v3118_v7 }
 0xab5   :  { %v1131_v44 = vpop.f32.mrf.mxu1 }
 0xab6   :  { %v1135_v45 = vadd.f32 %v1131_v44, %v895_v37  ;;  %v2723_v44 = vld [vmem:[%s3667_s3 + $0x1] ss:$0 sm:$0xff] }
 0xab7   :  { %v2931_v47 = vpop.f32.mrf.mxu1 }
 0xab8   :  { %v1136_v48 = vadd.f32 %v1135_v45, %v3219_v0  ;;  %v1176_v0 = vld [vmem:[%s3671_s10 + $0x10] sm:$0xff] }
 0xab9   :  { %2935 = vmatpush3.msra.mxu0 %v1176_v0 }
 0xaba   :  { %v3373_v49 = vadd.f32 %v2707_v46, %v1136_v48  ;;  %2936 = vmatprep.subr.mxu0 %v3118_v7 }
 0xabb   :  { %2937 = vmatpush3.msra.mxu0 %v1175_v57 }
 0xabc   :  { %v1147_v50 = vsel %vm57_vm0, %v3373_v49, 0.0  ;;  %2938 = vmatprep.subr.mxu0 %v3118_v7 }
 0xabd   :  { %1148 = vadd.xlane.f32.xlu1 %v1147_v50  ;;  %2939 = vmatpush3.msra.mxu0 %v1174_v58 }
 0xabe   :  { %2962 = vmatprep.subr.mxu0 %v3118_v7 }
 0xb46   :  { %v1149_v51 = vpop.xlane.xlu1 %1148 }
 0xb47   :  { %v1150_v52 = vmul.f32 0.03125, %v1149_v51 }
 0xb49   :  { %v1151_v53 = vsub.f32 %v3373_v49, %v1150_v52 }
 0xb4b   :  { %v1152_v54 = vmul.f32 %v1151_v53, %v1151_v53 }
 0xb4d   :  { %v1153_v55 = vsel %vm57_vm0, %v1152_v54, 0.0 }
 0xb4e   :  { %1154 = vadd.xlane.f32.xlu1 %v1153_v55 }
 0xbd7   :  { %v1155_v1 = vpop.xlane.xlu1 %1154 }
 0xbd8   :  { %v1156_v2 = vmul.f32 0.03125, %v1155_v1 }
 0xbda   :  { %v1157_v3 = vadd.f32 1e-12, %v1156_v2 }
 0xbdc   :  { %3094 = vrsqrt.f32 %v1157_v3 }
 0xbe9   :  { %v3095_v4 = vpop.eup %3094 }
 0xbea   :  { %v1159_v6 = vmul.f32 %v3095_v4, %v1151_v53 }
 0xbec   :  { %v1166_v9 = vmul.f32 %v2708_v5, %v1159_v6 }
 0xbee   :  { %v1173_v10 = vadd.f32 %v2709_v8, %v1166_v9 }
 0xbf0   :  { %2941 = vmatmul.mubr.msk.f32.vlgmr.msra.gmra.mxu0 %vm97_vm2, %v1173_v10 }
 0xbf1   :  { %2970 = vmatprep.mubr.msk.f32.mxu0 %vm3119_vm1, %v3118_v7  ;;  %2963 = vmatpush3.msra.mxu0 %v2721_v32 }
 0xbf2   :  { %2964 = vmatprep.subr.mxu0 %v3118_v7 }
 0xbf3   :  { %2965 = vmatpush3.msra.mxu0 %v2720_v33 }
 0xbf4   :  { %2966 = vmatprep.subr.mxu0 %v3118_v7 }
 0xbf5   :  { %2967 = vmatpush3.msra.mxu0 %v2719_v34 }
 0xbf6   :  { %2968 = vmatprep.subr.mxu0 %v3118_v7 }
 0xbf7   :  { %2969 = vmatpush3.msra.mxu0 %v2718_v35 }
 0xbf8   :  { %2973 = vmatprep.subr.mxu0 %v3118_v7 }
 0xcb0   :  { %v1254_v15 = vpop.f32.mrf.mxu0 }
 0xcb1   :  { %v1255_v16 = vadd.f32 %v2710_v14, %v1254_v15  ;;  %v2725_v14 = vld [vmem:[%s3669_s4 + $0x20] sm:$0xff]  ;;  %v2726_v15 = vld [vmem:[%s3669_s4 + $0x28] sm:$0xff] }
 0xcb2   :  { %v2942_v17 = vpop.f32.mrf.mxu0 }
 0xcb3   :  { %v1258_v18 = vmax.f32 %v1255_v16, 0.0 }
 0xcb5   :  { %2960 = vmatmul.mubr.msk.f32.vlgmr.msra.gmra.mxu1 %vm1267_vm7, %v1258_v18 }
 0xcb6   :  { %2980 = vmatprep.mubr.msk.f32.mxu1 %vm3119_vm1, %v3118_v7 }
 0xd75   :  { %v1337_v19 = vpop.f32.mrf.mxu1 }
 0xd76   :  { %v1341_v21 = vadd.f32 %v1337_v19, %v3373_v49 }
 0xd77   :  { %v2961_v22 = vpop.f32.mrf.mxu1 }
 0xd78   :  { %v3446_v24 = vadd.f32 %v2713_v20, %v1341_v21 }
 0xd7a   :  { %v1354_v25 = vsel %vm57_vm0, %v3446_v24, 0.0 }
 0xd7b   :  { %1355 = vadd.xlane.f32.xlu1 %v1354_v25 }
 0xe04   :  { %v1356_v26 = vpop.xlane.xlu1 %1355 }
 0xe05   :  { %v1357_v27 = vmul.f32 0.03125, %v1356_v26 }
 0xe07   :  { %v1358_v29 = vsub.f32 %v3446_v24, %v1357_v27 }
 0xe09   :  { %v1359_v30 = vmul.f32 %v1358_v29, %v1358_v29 }
 0xe0b   :  { %v1360_v31 = vsel %vm57_vm0, %v1359_v30, 0.0 }
 0xe0c   :  { %1361 = vadd.xlane.f32.xlu1 %v1360_v31 }
 0xe95   :  { %v1362_v36 = vpop.xlane.xlu1 %1361 }
 0xe96   :  { %v1363_v37 = vmul.f32 0.03125, %v1362_v36 }
 0xe98   :  { %v1364_v38 = vadd.f32 1e-12, %v1363_v37 }
 0xe9a   :  { %3096 = vrsqrt.f32 %v1364_v38 }
 0xea7   :  { %v3097_v39 = vpop.eup %3096 }
 0xea8   :  { %v1366_v41 = vmul.f32 %v3097_v39, %v1358_v29 }
 0xeaa   :  { %v1373_v23 = vmul.f32 %v2716_v40, %v1366_v41 }
 0xeac   :  { %v1380_v43 = vadd.f32 %v2717_v42, %v1373_v23 }
 0xeae   :  { %2971 = vmatmul.mubr.msk.f32.vlgmr.msra.gmra.mxu0 %vm97_vm2, %v1380_v43 }
 0xeaf   :  { %2975 = vmatprep.mubr.msk.f32.mxu0 %vm3119_vm1, %v3118_v7 }
 0xf6e   :  { %v1463_v45 = vpop.f32.mrf.mxu0 }
 0xf6f   :  { %v3480_v46 = vadd.f32 %v2723_v44, %v1463_v45  ;;  %v2727_v44 = vld [vmem:[%s3669_s4 + $0x30] sm:$0xff] }
 0xf70   :  { %v2972_v47 = vpop.f32.mrf.mxu0 }
 0xf71   :  { %1639 = vrot.lane.b32.xlu0 %v3480_v46, %s3122_s25  ;;  %1473 = vrot.lane.b32.xlu1 %v3480_v46, %s3121_s24  ;;  %s3685_s24 = smov 104   ;;  %s3686_s25 = smov 48  }
 0xf75   :  { %1637 = vrot.lane.b32.xlu0 %v3480_v46, %s3120_s23 }
 0xfe3   :  { %v1474_v48 = vpop.permute.xlu1 %1473  ;;  %v1640_v49 = vpop.permute.xlu0 %1639 }
 0xfe4   :  { %2974 = vmatpush3.xpose.msk.msra.mxu0 %vm178_vm3, %v1474_v48 }
 0xfe5   :  { %2983 = vmatprep.subr.mxu0 %v3118_v7 }
 0xfe7   :  { %2976 = vmatmul.mubr.msk.f32.vlgmr.msra.gmra.mxu0 %vm178_vm3, %v3480_v46  ;;  %v1638_v50 = vpop.permute.xlu0 %1637 }
 0xfe8   :  { %2984 = vmatpush3.xpose.msk.msra.mxu0 %vm178_vm3, %v1640_v49  ;;  %2985 = vmatprep.mubr.msk.f32.mxu0 %vm3119_vm1, %v3118_v7 }
 0xfe9   :  { %2993 = vmatprep.subr.mxu0 %v3118_v7 }
 0xfeb   :  { %2986 = vmatmul.mubr.msk.f32.vlgmr.msra.gmra.mxu0 %vm178_vm3, %v1638_v50 }
 0xfec   :  { %2995 = vmatprep.mubr.msk.f32.mxu0 %vm3119_vm1, %v3118_v7  ;;  %2994 = vmatpush3.msra.mxu0 %v2726_v15  ;;  %v2756_v15 = vld [vmem:[%s3671_s10 + $0x28] sm:$0xff] }
 0xfed   :  { %3003 = vmatprep.subr.mxu0 %v3118_v7 }
0x10a7   :  { %v1545_v51 = vpop.f32.mrf.mxu0 }
0x10a8   :  { %v1546_v52 = vadd.f32 %v1545_v51, %v3281_v28 }
0x10a9   :  { %v2977_v53 = vpop.f32.mrf.mxu0 }
0x10aa   :  { %v1549_v54 = vsel %vm253_vm4, %v1546_v52, -inf }
0x10ab   :  { %1550 = vmax.xlane.f32.xlu0 %v1549_v54  ;;  %v1711_v55 = vpop.f32.mrf.mxu0 }
0x10ac   :  { %v1712_v56 = vadd.f32 %v1711_v55, %v3281_v28 }
0x10ad   :  { %v2987_v0 = vpop.f32.mrf.mxu0 }
0x10ae   :  { %v1715_v57 = vsel %vm253_vm4, %v1712_v56, -inf }
0x10af   :  { %1716 = vmax.xlane.f32.xlu1 %v1715_v57 }
0x10c0   :  { %1726 = vrot.lane.b32.xlu1 %v3480_v46, %s3123_s28 }
0x10c4   :  { %1951 = vrot.lane.b32.xlu1 %v3480_v46, %s3125_s29  ;;  %s3687_s29 = smov 40  }
0x1134   :  { %v1551_v58 = vpop.xlane.xlu0 %1550 }
0x1135   :  { %v1552_v59 = vsub.f32 %v1546_v52, %v1551_v58 }
0x1137   :  { %v1553_v60 = vmul.f32 1.442695, %v1552_v59 }
0x1138   :  { %v1717_v61 = vpop.xlane.xlu1 %1716 }
0x1139   :  { %3098 = vpow2.f32 %v1553_v60  ;;  %v1718_v62 = vsub.f32 %v1712_v56, %v1717_v61 }
0x113b   :  { %v1719_v63 = vmul.f32 1.442695, %v1718_v62 }
0x113c   :  { %v1727_v11 = vpop.permute.xlu1 %1726 }
0x113d   :  { %3100 = vpow2.f32 %v1719_v63 }
0x1140   :  { %v1952_v19 = vpop.permute.xlu1 %1951 }
0x1146   :  { %v3099_v1 = vpop.eup %3098 }
0x1147   :  { %v1555_v2 = vsel %vm253_vm4, %v3099_v1, 0.0 }
0x1148   :  { %1556 = vadd.xlane.f32.xlu0 %v1555_v2 }
0x114a   :  { %v3101_v3 = vpop.eup %3100 }
0x114b   :  { %v1721_v4 = vsel %vm253_vm4, %v3101_v3, 0.0 }
0x114c   :  { %1722 = vadd.xlane.f32.xlu0 %v1721_v4 }
0x1162   :  { %1560 = vrot.lane.b32.xlu0 %v3480_v46, %s3124_s1 }
0x1166   :  { %1949 = vrot.lane.b32.xlu0 %v3480_v46, %s3126_s30 }
0x11d1   :  { %v1557_v5 = vpop.xlane.xlu0 %1556 }
0x11d2   :  { %3102 = vrcp.f32 %v1557_v5 }
0x11d5   :  { %v1723_v6 = vpop.xlane.xlu0 %1722 }
0x11d6   :  { %3104 = vrcp.f32 %v1723_v6 }
0x11d9   :  { %v1561_v8 = vpop.permute.xlu0 %1560 }
0x11da   :  { %2979 = vmatpush3.msk.msra.mxu1 %vm271_vm5, %v1561_v8 }
0x11db   :  { %2988 = vmatprep.subr.mxu1 %v3118_v7 }
0x11dd   :  { %v1950_v21 = vpop.permute.xlu0 %1949 }
0x11df   :  { %v3103_v9 = vpop.eup %3102 }
0x11e0   :  { %v1559_v10 = vmul.f32 %v3103_v9, %v3099_v1 }
0x11e2   :  { %2981 = vmatmul.mubr.msk.f32.vlgmr.msra.gmra.mxu1 %vm267_vm6, %v1559_v10 }
0x11e3   :  { %v3105_v12 = vpop.eup %3104  ;;  %2989 = vmatpush3.msk.msra.mxu1 %vm271_vm5, %v1727_v11  ;;  %2990 = vmatprep.mubr.msk.f32.mxu1 %vm3119_vm1, %v3118_v7 }
0x11e4   :  { %v1725_v13 = vmul.f32 %v3105_v12, %v3101_v3  ;;  %2998 = vmatprep.subr.mxu1 %v3118_v7  ;;  %v2750_v3 = vld [vmem:[%s3670_s5 + $0x1] ss:$0 sm:$0xff] }
0x11e6   :  { %2991 = vmatmul.mubr.msk.f32.vlgmr.msra.gmra.mxu1 %vm267_vm6, %v1725_v13 }
0x11e7   :  { %3000 = vmatprep.mubr.msk.f32.mxu1 %vm3119_vm1, %v3118_v7  ;;  %2999 = vmatpush3.msra.mxu1 %v2725_v14  ;;  %v2758_v14 = vld [vmem:[%s3671_s10 + $0x38] sm:$0xff] }
0x11e8   :  { %3008 = vmatprep.subr.mxu1 %v3118_v7 }
0x12a2   :  { %v1633_v16 = vpop.f32.mrf.mxu1 }
0x12a3   :  { %3001 = vmatmul.mubr.msk.f32.vlgmr.msra.gmra.mxu1 %vm178_vm3, %v1633_v16  ;;  %v2755_v16 = vld [vmem:[%s3671_s10 + $0x20] sm:$0xff] }
0x12a4   :  { %v2982_v17 = vpop.f32.mrf.mxu1  ;;  %3010 = vmatprep.mubr.msk.f32.mxu1 %vm3119_vm1, %v3118_v7 }
0x12a5   :  { %v2769_v17 = vld [vmem:[%s3672_s12 + $0x78] sm:$0xff] }
0x12a6   :  { %v1799_v18 = vpop.f32.mrf.mxu1 }
0x12a7   :  { %2996 = vmatmul.mubr.msk.f32.vlgmr.msra.gmra.mxu0 %vm178_vm3, %v1799_v18  ;;  %v2768_v18 = vld [vmem:[%s3672_s12 + $0x70] sm:$0xff] }
0x12a8   :  { %3004 = vmatpush3.xpose.msk.msra.mxu0 %vm178_vm3, %v1952_v19  ;;  %v2992_v20 = vpop.f32.mrf.mxu1  ;;  %3005 = vmatprep.mubr.msk.f32.mxu0 %vm3119_vm1, %v3118_v7  ;;  %v2767_v19 = vld [vmem:[%s3672_s12 + $0x68] sm:$0xff] }
0x12a9   :  { %3013 = vmatprep.subr.mxu0 %v3118_v7  ;;  %v2766_v20 = vld [vmem:[%s3672_s12 + $0x60] sm:$0xff] }
0x12ab   :  { %3006 = vmatmul.mubr.msk.f32.vlgmr.msra.gmra.mxu0 %vm178_vm3, %v1950_v21  ;;  %v2765_v21 = vld [vmem:[%s3672_s12 + $0x58] sm:$0xff] }
0x12ac   :  { %3015 = vmatprep.mubr.msk.f32.mxu0 %vm3119_vm1, %v3118_v7  ;;  %3014 = vmatpush3.msra.mxu0 %v2727_v44 }
0x12ad   :  { %3023 = vmatprep.subr.mxu0 %v3118_v7 }
0x1363   :  { %v1945_v22 = vpop.f32.mrf.mxu1 }
0x1365   :  { %v3002_v25 = vpop.f32.mrf.mxu1 }
0x1367   :  { %v1872_v26 = vpop.f32.mrf.mxu0 }
0x1368   :  { %v1946_v27 = vadd.f32 %v1945_v22, %v1872_v26 }
0x1369   :  { %v2997_v29 = vpop.f32.mrf.mxu0 }
0x136a   :  { %v2753_v29 = vld [vmem:[%s3673_s8 + $0x1] ss:$0 sm:$0xff] }
0x136b   :  { %v2023_v30 = vpop.f32.mrf.mxu0 }
0x136c   :  { %v2024_v31 = vadd.f32 %v2023_v30, %v3281_v28 }
0x136d   :  { %v3007_v32 = vpop.f32.mrf.mxu0 }
0x136e   :  { %v2027_v33 = vsel %vm253_vm4, %v2024_v31, -inf }
0x136f   :  { %2028 = vmax.xlane.f32.xlu1 %v2027_v33 }
0x1380   :  { %2191 = vrot.lane.b32.xlu1 %v3480_v46, %s3129_s22 }
0x1384   :  { %2189 = vrot.lane.b32.xlu1 %v3480_v46, %s3685_s24 }
0x13f8   :  { %v2029_v34 = vpop.xlane.xlu1 %2028 }
0x13f9   :  { %v2030_v35 = vsub.f32 %v2024_v31, %v2029_v34  ;;  %v2754_v31 = vld [vmem:[%s3674_s9 + $0x1] ss:$0 sm:$0xff]  ;;  %v2764_v34 = vld [vmem:[%s3672_s12 + $0x50] sm:$0xff] }
0x13fb   :  { %v2031_v36 = vmul.f32 1.442695, %v2030_v35  ;;  %v2763_v35 = vld [vmem:[%s3672_s12 + $0x48] sm:$0xff] }
0x13fc   :  { %v2192_v42 = vpop.permute.xlu1 %2191 }
0x13fd   :  { %3106 = vpow2.f32 %v2031_v36  ;;  %v2762_v36 = vld [vmem:[%s3672_s12 + $0x40] sm:$0xff] }
0x1400   :  { %v2190_v43 = vpop.permute.xlu1 %2189 }
0x140a   :  { %v3107_v37 = vpop.eup %3106 }
0x140b   :  { %v2033_v38 = vsel %vm253_vm4, %v3107_v37, 0.0 }
0x140c   :  { %2034 = vadd.xlane.f32.xlu0 %v2033_v38 }
0x1422   :  { %2038 = vrot.lane.b32.xlu0 %v3480_v46, %s3686_s25 }
0x1495   :  { %v2035_v39 = vpop.xlane.xlu0 %2034 }
0x1496   :  { %3108 = vrcp.f32 %v2035_v39 }
0x1499   :  { %v2039_v40 = vpop.permute.xlu0 %2038 }
0x149a   :  { %3009 = vmatpush3.msk.msra.mxu1 %vm271_vm5, %v2039_v40 }
0x149b   :  { %3018 = vmatprep.subr.mxu1 %v3118_v7 }
0x14a3   :  { %v3109_v41 = vpop.eup %3108 }
0x14a4   :  { %v2037_v23 = vmul.f32 %v3109_v41, %v3107_v37  ;;  %v2760_v37 = vld [vmem:[%s3675_s11 + $0x1] ss:$0 sm:$0xff] }
0x14a6   :  { %3011 = vmatmul.mubr.msk.f32.vlgmr.msra.gmra.mxu1 %vm267_vm6, %v2037_v23  ;;  %v2772_v23 = vld [vmem:[%s3676_s13 + $0x1] ss:$0 sm:$0xff] }
0x14a7   :  { %3019 = vmatpush3.xpose.msk.msra.mxu1 %vm178_vm3, %v2192_v42  ;;  %3020 = vmatprep.mubr.msk.f32.mxu1 %vm3119_vm1, %v3118_v7 }
0x14a8   :  { %3028 = vmatprep.subr.mxu1 %v3118_v7 }
0x14aa   :  { %3021 = vmatmul.mubr.msk.f32.vlgmr.msra.gmra.mxu1 %vm178_vm3, %v2190_v43 }
0x14ab   :  { %3030 = vmatprep.mubr.msk.f32.mxu1 %vm3119_vm1, %v3118_v7 }
0x1566   :  { %v2111_v45 = vpop.f32.mrf.mxu1 }
0x1567   :  { %3016 = vmatmul.mubr.msk.f32.vlgmr.msra.gmra.mxu0 %vm178_vm3, %v2111_v45 }
0x1568   :  { %v3012_v47 = vpop.f32.mrf.mxu1  ;;  %3025 = vmatprep.mubr.msk.f32.mxu0 %vm3119_vm1, %v3118_v7 }
0x156a   :  { %v2263_v48 = vpop.f32.mrf.mxu1 }
0x156b   :  { %v2264_v49 = vadd.f32 %v2263_v48, %v3281_v28  ;;  %v2728_v28 = vld [vmem:[%s3669_s4 + $0x38] sm:$0xff] }
0x156c   :  { %v3022_v50 = vpop.f32.mrf.mxu1  ;;  %3029 = vmatpush3.msra.mxu1 %v2728_v28  ;;  %v2774_v28 = vld [vmem:[%s3678_s15] ss:$0 sm:$0xff] }
0x156d   :  { %v2267_v51 = vsel %vm253_vm4, %v2264_v49, -inf  ;;  %3044 = vmatprep.subr.mxu1 %v3118_v7 }
0x156e   :  { %2268 = vmax.xlane.f32.xlu0 %v2267_v51 }
0x1584   :  { %2278 = vrot.lane.b32.xlu0 %v3480_v46, %s3687_s29 }
0x15f7   :  { %v2269_v52 = vpop.xlane.xlu0 %2268 }
0x15f8   :  { %v2270_v53 = vsub.f32 %v2264_v49, %v2269_v52 }
0x15fa   :  { %v2271_v54 = vmul.f32 1.442695, %v2270_v53 }
0x15fb   :  { %v2279_v55 = vpop.permute.xlu0 %2278 }
0x15fc   :  { %3110 = vpow2.f32 %v2271_v54  ;;  %3024 = vmatpush3.msk.msra.mxu0 %vm271_vm5, %v2279_v55 }
0x15fd   :  { %3033 = vmatprep.subr.mxu0 %v3118_v7 }
0x1609   :  { %v3111_v56 = vpop.eup %3110 }
0x160a   :  { %v2273_v0 = vsel %vm253_vm4, %v3111_v56, 0.0 }
0x160b   :  { %2274 = vadd.xlane.f32.xlu1 %v2273_v0 }
0x1627   :  { %v2184_v57 = vpop.f32.mrf.mxu0 }
0x1628   :  { %v2188_v46 = vadd.f32 %v2184_v57, %v1946_v27 }
0x1629   :  { %v3017_v58 = vpop.f32.mrf.mxu0 }
0x1694   :  { %v2275_v59 = vpop.xlane.xlu1 %2274 }
0x1695   :  { %3112 = vrcp.f32 %v2275_v59 }
0x16a2   :  { %v3113_v60 = vpop.eup %3112 }
0x16a3   :  { %v2277_v61 = vmul.f32 %v3113_v60, %v3111_v56  ;;  %v2773_v56 = vld [vmem:[%s3677_s14] ss:$0 sm:$0xff] }
0x16a5   :  { %3026 = vmatmul.mubr.msk.f32.vlgmr.msra.gmra.mxu0 %vm267_vm6, %v2277_v61 }
0x16a6   :  { %3041 = vmatprep.mubr.msk.f32.mxu0 %vm3119_vm1, %v3118_v7  ;;  %3034 = vmatpush3.msra.mxu0 %v2758_v14 }
0x16a7   :  { %3035 = vmatprep.subr.mxu0 %v3118_v7 }
0x1765   :  { %v2351_v62 = vpop.f32.mrf.mxu0 }
0x1766   :  { %3031 = vmatmul.mubr.msk.f32.vlgmr.msra.gmra.mxu1 %vm178_vm3, %v2351_v62 }
0x1767   :  { %v3027_v63 = vpop.f32.mrf.mxu0  ;;  %3060 = vmatprep.mubr.msk.f32.mxu1 %vm3119_vm1, %v3118_v7  ;;  %3045 = vmatpush3.msra.mxu1 %v2769_v17 }
0x1768   :  { %3046 = vmatprep.subr.mxu1 %v3118_v7 }
0x1769   :  { %3047 = vmatpush3.msra.mxu1 %v2768_v18 }
0x176a   :  { %3048 = vmatprep.subr.mxu1 %v3118_v7 }
0x176b   :  { %3049 = vmatpush3.msra.mxu1 %v2767_v19 }
0x176c   :  { %3050 = vmatprep.subr.mxu1 %v3118_v7 }
0x176d   :  { %3051 = vmatpush3.msra.mxu1 %v2766_v20 }
0x176e   :  { %3052 = vmatprep.subr.mxu1 %v3118_v7 }
0x176f   :  { %3053 = vmatpush3.msra.mxu1 %v2765_v21 }
0x1770   :  { %3054 = vmatprep.subr.mxu1 %v3118_v7 }
0x1771   :  { %3055 = vmatpush3.msra.mxu1 %v2764_v34 }
0x1772   :  { %3056 = vmatprep.subr.mxu1 %v3118_v7 }
0x1773   :  { %3057 = vmatpush3.msra.mxu1 %v2763_v35 }
0x1774   :  { %3058 = vmatprep.subr.mxu1 %v3118_v7 }
0x1775   :  { %3059 = vmatpush3.msra.mxu1 %v2762_v36 }
0x1826   :  { %v2424_v1 = vpop.f32.mrf.mxu1 }
0x1827   :  { %v2428_v2 = vadd.f32 %v2424_v1, %v2188_v46 }
0x1828   :  { %v3032_v4 = vpop.f32.mrf.mxu1 }
0x1829   :  { %v2429_v5 = vadd.f32 %v2428_v2, %v3446_v24  ;;  %v2757_v24 = vld [vmem:[%s3671_s10 + $0x30] sm:$0xff] }
0x182a   :  { %3036 = vmatpush3.msra.mxu0 %v2757_v24 }
0x182b   :  { %v2438_v6 = vadd.f32 %v2750_v3, %v2429_v5  ;;  %3037 = vmatprep.subr.mxu0 %v3118_v7 }
0x182c   :  { %3038 = vmatpush3.msra.mxu0 %v2756_v15 }
0x182d   :  { %v2443_v8 = vsel %vm57_vm0, %v2438_v6, 0.0  ;;  %3039 = vmatprep.subr.mxu0 %v3118_v7 }
0x182e   :  { %2444 = vadd.xlane.f32.xlu1 %v2443_v8  ;;  %3040 = vmatpush3.msra.mxu0 %v2755_v16 }
0x18b7   :  { %v2445_v9 = vpop.xlane.xlu1 %2444 }
0x18b8   :  { %v2446_v10 = vmul.f32 0.03125, %v2445_v9 }
0x18ba   :  { %v2447_v11 = vsub.f32 %v2438_v6, %v2446_v10 }
0x18bc   :  { %v2448_v12 = vmul.f32 %v2447_v11, %v2447_v11 }
0x18be   :  { %v2449_v13 = vsel %vm57_vm0, %v2448_v12, 0.0 }
0x18bf   :  { %2450 = vadd.xlane.f32.xlu1 %v2449_v13 }
0x1948   :  { %v2451_v22 = vpop.xlane.xlu1 %2450 }
0x1949   :  { %v2452_v25 = vmul.f32 0.03125, %v2451_v22 }
0x194b   :  { %v2453_v26 = vadd.f32 1e-12, %v2452_v25 }
0x194d   :  { %3114 = vrsqrt.f32 %v2453_v26 }
0x195a   :  { %v3115_v27 = vpop.eup %3114 }
0x195b   :  { %v2455_v30 = vmul.f32 %v3115_v27, %v2447_v11 }
0x195d   :  { %v2462_v32 = vmul.f32 %v2753_v29, %v2455_v30 }
0x195f   :  { %v2469_v33 = vadd.f32 %v2754_v31, %v2462_v32 }
0x1961   :  { %3042 = vmatmul.mubr.msk.f32.vlgmr.msra.gmra.mxu0 %vm97_vm2, %v2469_v33 }
0x1a21   :  { %v2552_v38 = vpop.f32.mrf.mxu0 }
0x1a22   :  { %v2553_v39 = vadd.f32 %v2760_v37, %v2552_v38 }
0x1a23   :  { %v3043_v40 = vpop.f32.mrf.mxu0 }
0x1a24   :  { %v2556_v41 = vmax.f32 %v2553_v39, 0.0 }
0x1a26   :  { %3061 = vmatmul.mubr.msk.f32.vlgmr.msra.gmra.mxu1 %vm1267_vm7, %v2556_v41 }
0x1ae6   :  { %v2635_v42 = vpop.f32.mrf.mxu1 }
0x1ae7   :  { %v2639_v43 = vadd.f32 %v2635_v42, %v2438_v6 }
0x1ae8   :  { %v3062_v44 = vpop.f32.mrf.mxu1 }
0x1ae9   :  { %v2648_v45 = vadd.f32 %v2772_v23, %v2639_v43 }
0x1aeb   :  { %v2651_v7 = vsel %vm57_vm0, %v2648_v45, 0.0 }
0x1aec   :  { %2652 = vadd.xlane.f32.xlu1 %v2651_v7 }
0x1b75   :  { %v2653_v47 = vpop.xlane.xlu1 %2652 }
0x1b76   :  { %v2654_v48 = vmul.f32 0.03125, %v2653_v47 }
0x1b78   :  { %v2655_v49 = vsub.f32 %v2648_v45, %v2654_v48 }
0x1b7a   :  { %v2656_v50 = vmul.f32 %v2655_v49, %v2655_v49 }
0x1b7c   :  { %v2657_v51 = vsel %vm57_vm0, %v2656_v50, 0.0 }
0x1b7d   :  { %2658 = vadd.xlane.f32.xlu1 %v2657_v51 }
0x1c06   :  { %v2659_v52 = vpop.xlane.xlu1 %2658 }
0x1c07   :  { %v2660_v53 = vmul.f32 0.03125, %v2659_v52 }
0x1c09   :  { %v2661_v54 = vadd.f32 1e-12, %v2660_v53 }
0x1c0b   :  { %3116 = vrsqrt.f32 %v2661_v54 }
0x1c18   :  { %v3117_v55 = vpop.eup %3116 }
0x1c19   :  { %v2663_v0 = vmul.f32 %v3117_v55, %v2655_v49 }
0x1c1b   :  { %v2670_v57 = vmul.f32 %v2773_v56, %v2663_v0 }
0x1c1d   :  { %v2677_v46 = vadd.f32 %v2774_v28, %v2670_v57 }
0x1c1f   :  { %2678 = vst.msk [vmem:[%s3679_s16] sm:$0x3f] %vm57_vm0, %v2677_v46 }

</bundles_post_ra>
